<compile_context>
chip_gen: v6e
topology: v6e:2x2x1
jax: 0.10.0
libtpu: 0.0.40
codegen_flags: <defaults>
</compile_context>

<pallas_src>
import functools

import jax
import jax.numpy as jnp
from jax import lax
from jax.experimental import pallas as pl
from jax.experimental.pallas import tpu as pltpu

_LANE = 128


def _round_up(x, m):
    return (x + m - 1) // m * m


def _vmem_limit_bytes():
    cap = 64 * 1024 * 1024                      # conservative default (v7x)
    try:
        cap = int(getattr(pltpu.get_tpu_info(), "vmem_capacity_bytes", cap))
    except Exception:
        pass
    # leave headroom for Mosaic-internal scratch, cap for older generations
    return int(min(max(cap - 16 * 1024 * 1024, 32 * 1024 * 1024),
                   100 * 1024 * 1024))


_VMEM_LIMIT = _vmem_limit_bytes()


# ---------------------------------------------------------------------------
# Fused Bottleneck kernel (one grid step == one batch image)
# ---------------------------------------------------------------------------
def _bottleneck_kernel(x_ref, w1_ref, b1_ref, w2_ref, b2_ref, w3_ref, b3_ref,
                       *rest, stride, identity_shortcut):
    if identity_shortcut:
        o_ref, h1p_ref = rest
        ws_ref = None
    else:
        ws_ref, o_ref, h1p_ref = rest

    H, W, Cin_p = x_ref.shape
    Pp = w1_ref.shape[1]
    Hout, Wout, Cout_p = o_ref.shape

    # ---- conv1 (1x1); BN1 scale folded into w1 -> bias + relu only ---------
    x_rows = x_ref[...].reshape(H * W, Cin_p)                        # bf16
    h1 = jnp.dot(x_rows, w1_ref[...], preferred_element_type=jnp.float32)
    h1 = jnp.maximum(h1 + b1_ref[...], 0.0)

    # ---- halo scratch for the 3x3 taps --------------------------------------
    # Scratch persists across grid steps; the interior [1:H+1, 1:W+1] is fully
    # overwritten every step, so only the thin border strips need re-zeroing.
    # (This stays correct under megacore sharding, unlike a program_id==0 init.)
    zrow = jnp.zeros(h1p_ref.shape[1:], h1p_ref.dtype)
    h1p_ref[0] = zrow
    h1p_ref[H + 1] = zrow
    zcol = jnp.zeros((h1p_ref.shape[0], 1, Pp), h1p_ref.dtype)
    h1p_ref[pl.ds(0, H + 2), pl.ds(0, 1), :] = zcol
    h1p_ref[pl.ds(0, H + 2), pl.ds(W + 1, 1), :] = zcol
    h1p_ref[pl.ds(1, H), pl.ds(1, W), :] = (
        h1.reshape(H, W, Pp).astype(h1p_ref.dtype))

    # ---- conv2 (3x3, stride, pad=1) as 9 accumulated MXU taps ---------------
    def tap(kh, kw):
        if stride == 1:
            patch = h1p_ref[pl.ds(kh, Hout), pl.ds(kw, Wout), :]
        else:
            # TODO(synk): for stride > 1 these sublane-strided reads should use
            # a parity-split (even/odd W) scratch layout for contiguous loads.
            patch = h1p_ref[pl.ds(kh, Hout, stride=stride),
                            pl.ds(kw, Wout, stride=stride), :]
        return jnp.dot(patch.reshape(Hout * Wout, Pp), w2_ref[kh, kw],
                       preferred_element_type=jnp.float32)

    acc = tap(0, 0)                       # init from first tap: no zero store
    for kh in range(3):
        for kw in range(3):
            if kh == 0 and kw == 0:
                continue
            acc = acc + tap(kh, kw)
    h2 = jnp.maximum(acc + b2_ref[...], 0.0).astype(jnp.bfloat16)

    # ---- conv3 (1x1) + shortcut + bias + relu, all in VMEM ------------------
    out = jnp.dot(h2, w3_ref[...], preferred_element_type=jnp.float32)
    if identity_shortcut:
        out = out + x_rows.astype(jnp.float32)
    else:
        if stride == 1:
            xs = x_rows
        else:
            xs = x_ref[pl.ds(0, Hout, stride=stride),
                       pl.ds(0, Wout, stride=stride), :].reshape(
                           Hout * Wout, Cin_p)
        out = out + jnp.dot(xs, ws_ref[...], preferred_element_type=jnp.float32)
    out = jnp.maximum(out + b3_ref[...], 0.0)
    o_ref[...] = out.reshape(Hout, Wout, Cout_p)


# ---------------------------------------------------------------------------
# Parameter prep: BN folding + scale-into-weight fold (f32) + channel padding
# ---------------------------------------------------------------------------
def _fold_bn(bn, eps=1e-5):
    gamma, beta, mean, var = bn
    s = gamma / jnp.sqrt(var + eps)
    b = beta - mean * s
    return s, b                                           # (C,) f32 each


def _prep_w1x1_scaled(w, s, cin_pad, cout_pad):
    """(Cout,Cin,1,1) f32 * per-Cout scale -> padded (Cin_p, Cout_p) bf16."""
    cout, cin = w.shape[0], w.shape[1]
    wt = w.reshape(cout, cin).T * s[None, :]               # scale fold in f32
    wt = jnp.pad(wt, ((0, cin_pad - cin), (0, cout_pad - cout)))
    return wt.astype(jnp.bfloat16)


def _prep_w3x3_scaled(w, s, cin_pad, cout_pad):
    """(Cout,Cin,3,3) f32 * per-Cout scale -> padded (3,3,Cin_p,Cout_p) bf16."""
    cout, cin = w.shape[0], w.shape[1]
    wt = jnp.transpose(w, (2, 3, 1, 0)) * s[None, None, None, :]
    wt = jnp.pad(wt, ((0, 0), (0, 0), (0, cin_pad - cin), (0, cout_pad - cout)))
    return wt.astype(jnp.bfloat16)


def _pad_bias(b, c_pad):
    return jnp.pad(b, (0, c_pad - b.shape[0])).reshape(1, c_pad).astype(jnp.float32)


# ---------------------------------------------------------------------------
# Bottleneck forward (Pallas wrapper)
# ---------------------------------------------------------------------------
def bottleneck_pallas(x_nchw, params, stride):
    """x_nchw: (N, Cin, H, W) f32 -> (N, 4*planes, Hout, Wout) f32."""
    N, Cin, H, W = x_nchw.shape
    P = params["w1"].shape[0]
    Cout = 4 * P
    Hout = (H - 1) // stride + 1
    Wout = (W - 1) // stride + 1

    Cin_p = _round_up(Cin, _LANE)
    P_p = _round_up(P, _LANE)
    Cout_p = _round_up(Cout, _LANE)

    identity = (stride == 1 and Cin == Cout)

    # TODO(synk): keep activations NHWC (and bf16) model-wide so these boundary
    # transposes / casts (extra HBM passes) disappear.
    x = jnp.transpose(x_nchw, (0, 2, 3, 1))                           # NHWC
    x_b = jnp.pad(x, ((0, 0), (0, 0), (0, 0), (0, Cin_p - Cin))).astype(jnp.bfloat16)

    s1, b1 = _fold_bn(params["bn1"])
    s2, b2 = _fold_bn(params["bn2"])
    s3, b3 = _fold_bn(params["bn3"])
    w1 = _prep_w1x1_scaled(params["w1"], s1, Cin_p, P_p)
    w2 = _prep_w3x3_scaled(params["w2"], s2, P_p, P_p)
    w3 = _prep_w1x1_scaled(params["w3"], s3, P_p, Cout_p)

    args = [x_b, w1, _pad_bias(b1, P_p), w2, _pad_bias(b2, P_p), w3]
    in_specs = [
        pl.BlockSpec((None, H, W, Cin_p), lambda n: (n, 0, 0, 0)),
        pl.BlockSpec((Cin_p, P_p), lambda n: (0, 0)),
        pl.BlockSpec((1, P_p), lambda n: (0, 0)),
        pl.BlockSpec((3, 3, P_p, P_p), lambda n: (0, 0, 0, 0)),
        pl.BlockSpec((1, P_p), lambda n: (0, 0)),
        pl.BlockSpec((P_p, Cout_p), lambda n: (0, 0)),
    ]
    if identity:
        args.append(_pad_bias(b3, Cout_p))
        in_specs.append(pl.BlockSpec((1, Cout_p), lambda n: (0, 0)))
    else:
        ss, bs = _fold_bn(params["bn_s"])
        ws = _prep_w1x1_scaled(params["w_s"], ss, Cin_p, Cout_p)
        args += [_pad_bias(b3 + bs, Cout_p), ws]
        in_specs += [pl.BlockSpec((1, Cout_p), lambda n: (0, 0)),
                     pl.BlockSpec((Cin_p, Cout_p), lambda n: (0, 0))]

    Wp2 = _round_up(W + 2, 8)        # sublane-aligned halo width

    flops = 2 * N * (H * W * Cin_p * P_p + 9 * Hout * Wout * P_p * P_p
                     + Hout * Wout * P_p * Cout_p
                     + (0 if identity else Hout * Wout * Cin_p * Cout_p))
    bytes_accessed = (2 * N * H * W * Cin_p + 4 * N * Hout * Wout * Cout_p
                      + 2 * (Cin_p * P_p + 9 * P_p * P_p + P_p * Cout_p
                             + (0 if identity else Cin_p * Cout_p))
                      + 4 * (2 * P_p + Cout_p))

    # TODO(synk): for small-spatial stages (14x14 / 7x7) block several batch
    # images (or H tiles) per grid step so the MXU M dim is filled, per-step
    # overhead is amortized, and both v7x TensorCores have work when N is small.
    out = pl.pallas_call(
        functools.partial(_bottleneck_kernel, stride=stride,
                          identity_shortcut=identity),
        out_shape=jax.ShapeDtypeStruct((N, Hout, Wout, Cout_p), jnp.float32),
        grid=(N,),
        in_specs=in_specs,
        out_specs=pl.BlockSpec((None, Hout, Wout, Cout_p),
                               lambda n: (n, 0, 0, 0)),
        scratch_shapes=[pltpu.VMEM((H + 2, Wp2, P_p), jnp.bfloat16)],
        compiler_params=pltpu.CompilerParams(
            dimension_semantics=("parallel",),
            vmem_limit_bytes=_VMEM_LIMIT),
        cost_estimate=pl.CostEstimate(flops=flops, transcendentals=0,
                                      bytes_accessed=bytes_accessed),
    )(*args)

    out = out[..., :Cout]
    return jnp.transpose(out, (0, 3, 1, 2))                           # NCHW


# ---------------------------------------------------------------------------
# Pure-JAX reference (correctness check)
# ---------------------------------------------------------------------------
def _bn_ref(x, gamma, beta, mean, var, eps=1e-5):
    s = gamma / jnp.sqrt(var + eps)
    b = beta - mean * s
    return x * s[None, :, None, None] + b[None, :, None, None]


def _conv_ref(x, w, stride=1, pad=0):
    return lax.conv_general_dilated(
        x, w, window_strides=(stride, stride),
        padding=[(pad, pad), (pad, pad)],
        dimension_numbers=("NCHW", "OIHW", "NCHW"))


def bottleneck_ref(x, params, stride):
    out = jax.nn.relu(_bn_ref(_conv_ref(x, params["w1"]), *params["bn1"]))
    out = jax.nn.relu(_bn_ref(_conv_ref(out, params["w2"], stride=stride, pad=1),
                              *params["bn2"]))
    out = _bn_ref(_conv_ref(out, params["w3"]), *params["bn3"])
    Cin, Cout = x.shape[1], params["w3"].shape[0]
    if stride != 1 or Cin != Cout:
        sc = _bn_ref(_conv_ref(x, params["w_s"], stride=stride), *params["bn_s"])
    else:
        sc = x
    return jax.nn.relu(out + sc)


# ---------------------------------------------------------------------------
# Main
# ---------------------------------------------------------------------------
if __name__ == "__main__":
    key = jax.random.PRNGKey(0)
    expansion = 4

    def bn_params(k, c):
        k1, k2, k3, k4 = jax.random.split(k, 4)
        gamma = 0.5 + jax.random.uniform(k1, (c,), jnp.float32)
        beta = 0.1 * jax.random.normal(k2, (c,), jnp.float32)
        mean = 0.1 * jax.random.normal(k3, (c,), jnp.float32)
        var = 0.5 + jax.random.uniform(k4, (c,), jnp.float32)
        return (gamma, beta, mean, var)

    def make_params(k, in_planes, planes, stride):
        ks = jax.random.split(k, 8)
        cout = expansion * planes
        p = {
            "w1": 0.1 * jax.random.normal(ks[0], (planes, in_planes, 1, 1), jnp.float32),
            "bn1": bn_params(ks[1], planes),
            "w2": 0.1 * jax.random.normal(ks[2], (planes, planes, 3, 3), jnp.float32),
            "bn2": bn_params(ks[3], planes),
            "w3": 0.1 * jax.random.normal(ks[4], (cout, planes, 1, 1), jnp.float32),
            "bn3": bn_params(ks[5], cout),
        }
        if stride != 1 or in_planes != cout:
            p["w_s"] = 0.1 * jax.random.normal(ks[6], (cout, in_planes, 1, 1), jnp.float32)
            p["bn_s"] = bn_params(ks[7], cout)
        return p

    fwd = jax.jit(bottleneck_pallas, static_argnums=2)

    configs = [
        # (in_planes, planes, stride, N, H, W)
        (16, 8, 1, 2, 8, 8),    # projection shortcut (channel expansion)
        (32, 8, 1, 2, 8, 8),    # identity shortcut
    ]
    for idx, (cin, planes, stride, Nb, H, W) in enumerate(configs):
        k_p, k_x, key = jax.random.split(key, 3)
        params = make_params(k_p, cin, planes, stride)
        x = jax.random.normal(k_x, (Nb, cin, H, W), jnp.float32)

        out = jax.block_until_ready(fwd(x, params, stride))
        ref = jax.block_until_ready(bottleneck_ref(x, params, stride))

        Hout = (H - 1) // stride + 1
        Wout = (W - 1) // stride + 1
        assert out.shape == ref.shape == (Nb, expansion * planes, Hout, Wout)
        max_err = float(jnp.max(jnp.abs(out - ref)))
        # bf16 MXU operands / folded-scale bf16 weights with f32 accumulation.
        assert jnp.allclose(out, ref, atol=4e-2, rtol=4e-2), (idx, max_err)

    print("KERNEL_OK")
</pallas_src>

<mosaic_0001>
module attributes {stable_mosaic.version = 11 : i64} {
  func.func @_bottleneck_kernel(%arg0: i32, %arg1: memref<1x8x8x128xbf16, #tpu.memory_space<vmem>>, %arg2: memref<128x128xbf16, #tpu.memory_space<vmem>>, %arg3: memref<1x128xf32, #tpu.memory_space<vmem>>, %arg4: memref<3x3x128x128xbf16, #tpu.memory_space<vmem>>, %arg5: memref<1x128xf32, #tpu.memory_space<vmem>>, %arg6: memref<128x128xbf16, #tpu.memory_space<vmem>>, %arg7: memref<1x128xf32, #tpu.memory_space<vmem>>, %arg8: memref<128x128xbf16, #tpu.memory_space<vmem>>, %arg9: memref<1x8x8x128xf32, #tpu.memory_space<vmem>>, %arg10: memref<10x16x128xbf16, #tpu.memory_space<vmem>>) attributes {dimension_semantics = [#tpu.dimension_semantics<parallel>], iteration_bounds = array<i64: 2>, scalar_prefetch = 0 : i64, scratch_operands = 1 : i64, tpu.core_type = #tpu.core_type<tc>, window_params = [{transform_indices = @transform_0, window_bounds = array<i64: 1, 8, 8, 128>}, {pipeline_mode = #tpu.pipeline_mode<synchronous>, transform_indices = @transform_1, window_bounds = array<i64: 128, 128>}, {pipeline_mode = #tpu.pipeline_mode<synchronous>, transform_indices = @transform_2, window_bounds = array<i64: 1, 128>}, {pipeline_mode = #tpu.pipeline_mode<synchronous>, transform_indices = @transform_3, window_bounds = array<i64: 3, 3, 128, 128>}, {pipeline_mode = #tpu.pipeline_mode<synchronous>, transform_indices = @transform_4, window_bounds = array<i64: 1, 128>}, {pipeline_mode = #tpu.pipeline_mode<synchronous>, transform_indices = @transform_5, window_bounds = array<i64: 128, 128>}, {pipeline_mode = #tpu.pipeline_mode<synchronous>, transform_indices = @transform_6, window_bounds = array<i64: 1, 128>}, {pipeline_mode = #tpu.pipeline_mode<synchronous>, transform_indices = @transform_7, window_bounds = array<i64: 128, 128>}, {transform_indices = @transform_8, window_bounds = array<i64: 1, 8, 8, 128>}]} {
    %c0 = arith.constant 0 : index
    %c0_0 = arith.constant 0 : index
    %c0_1 = arith.constant 0 : index
    %c0_2 = arith.constant 0 : index
    %0 = vector.load %arg1[%c0, %c0_0, %c0_1, %c0_2] : memref<1x8x8x128xbf16, #tpu.memory_space<vmem>>, vector<1x8x8x128xbf16>
    %1 = vector.shape_cast %0 : vector<1x8x8x128xbf16> to vector<8x8x128xbf16>
    %2 = vector.shape_cast %1 : vector<8x8x128xbf16> to vector<64x128xbf16>
    %c0_3 = arith.constant 0 : index
    %c0_4 = arith.constant 0 : index
    %3 = vector.load %arg2[%c0_3, %c0_4] : memref<128x128xbf16, #tpu.memory_space<vmem>>, vector<128x128xbf16>
    %cst = arith.constant dense<0.000000e+00> : vector<64x128xf32>
    %4 = tpu.matmul %2, %3, %cst {dimension_numbers = #tpu.dot_dimension_numbers<[1], [0], [0], [1], [0, 0, 1, 1], [], []>} : vector<64x128xbf16>, vector<128x128xbf16>, vector<64x128xf32> -> vector<64x128xf32>
    %c0_5 = arith.constant 0 : index
    %c0_6 = arith.constant 0 : index
    %5 = vector.load %arg3[%c0_5, %c0_6] : memref<1x128xf32, #tpu.memory_space<vmem>>, vector<1x128xf32>
    %6 = vector.broadcast %5 : vector<1x128xf32> to vector<64x128xf32>
    %7 = arith.addf %4, %6 : vector<64x128xf32>
    %cst_7 = arith.constant 0.000000e+00 : f32
    %8 = vector.broadcast %cst_7 : f32 to vector<64x128xf32>
    %9 = arith.maximumf %7, %8 : vector<64x128xf32>
    %cst_8 = arith.constant 0.000000e+00 : bf16
    %10 = vector.broadcast %cst_8 : bf16 to vector<16x128xbf16>
    %c0_9 = arith.constant 0 : index
    %c0_10 = arith.constant 0 : index
    %c0_11 = arith.constant 0 : index
    %11 = vector.load %arg10[%c0_9, %c0_10, %c0_11] : memref<10x16x128xbf16, #tpu.memory_space<vmem>>, vector<1x16x128xbf16>
    %12 = vector.shape_cast %11 : vector<1x16x128xbf16> to vector<16x128xbf16>
    %13 = vector.shape_cast %10 : vector<16x128xbf16> to vector<1x16x128xbf16>
    tpu.vector_store %arg10[%c0_9, %c0_10, %c0_11], %13 {strides = array<i32>} : memref<10x16x128xbf16, #tpu.memory_space<vmem>>, vector<1x16x128xbf16>,
    %c9 = arith.constant 9 : index
    %c0_12 = arith.constant 0 : index
    %c0_13 = arith.constant 0 : index
    %14 = vector.load %arg10[%c9, %c0_12, %c0_13] : memref<10x16x128xbf16, #tpu.memory_space<vmem>>, vector<1x16x128xbf16>
    %15 = vector.shape_cast %14 : vector<1x16x128xbf16> to vector<16x128xbf16>
    %16 = vector.shape_cast %10 : vector<16x128xbf16> to vector<1x16x128xbf16>
    tpu.vector_store %arg10[%c9, %c0_12, %c0_13], %16 {strides = array<i32>} : memref<10x16x128xbf16, #tpu.memory_space<vmem>>, vector<1x16x128xbf16>,
    %cst_14 = arith.constant 0.000000e+00 : bf16
    %17 = vector.broadcast %cst_14 : bf16 to vector<10x1x128xbf16>
    %c0_15 = arith.constant 0 : index
    %c0_16 = arith.constant 0 : index
    %c0_17 = arith.constant 0 : index
    %18 = vector.load %arg10[%c0_15, %c0_16, %c0_17] : memref<10x16x128xbf16, #tpu.memory_space<vmem>>, vector<10x1x128xbf16>
    tpu.vector_store %arg10[%c0_15, %c0_16, %c0_17], %17 {strides = array<i32>} : memref<10x16x128xbf16, #tpu.memory_space<vmem>>, vector<10x1x128xbf16>,
    %c0_18 = arith.constant 0 : index
    %c9_19 = arith.constant 9 : index
    %c0_20 = arith.constant 0 : index
    %19 = vector.load %arg10[%c0_18, %c9_19, %c0_20] : memref<10x16x128xbf16, #tpu.memory_space<vmem>>, vector<10x1x128xbf16>
    tpu.vector_store %arg10[%c0_18, %c9_19, %c0_20], %17 {strides = array<i32>} : memref<10x16x128xbf16, #tpu.memory_space<vmem>>, vector<10x1x128xbf16>,
    %20 = vector.shape_cast %9 : vector<64x128xf32> to vector<8x8x128xf32>
    %21 = arith.truncf %20 : vector<8x8x128xf32> to vector<8x8x128xbf16>
    %c1 = arith.constant 1 : index
    %c1_21 = arith.constant 1 : index
    %c0_22 = arith.constant 0 : index
    %22 = vector.load %arg10[%c1, %c1_21, %c0_22] : memref<10x16x128xbf16, #tpu.memory_space<vmem>>, vector<8x8x128xbf16>
    tpu.vector_store %arg10[%c1, %c1_21, %c0_22], %21 {strides = array<i32>} : memref<10x16x128xbf16, #tpu.memory_space<vmem>>, vector<8x8x128xbf16>,
    %c0_23 = arith.constant 0 : index
    %c0_24 = arith.constant 0 : index
    %c0_25 = arith.constant 0 : index
    %23 = vector.load %arg10[%c0_23, %c0_24, %c0_25] : memref<10x16x128xbf16, #tpu.memory_space<vmem>>, vector<8x8x128xbf16>
    %24 = vector.shape_cast %23 : vector<8x8x128xbf16> to vector<64x128xbf16>
    %c0_26 = arith.constant 0 : index
    %c0_27 = arith.constant 0 : index
    %c0_28 = arith.constant 0 : index
    %c0_29 = arith.constant 0 : index
    %25 = vector.load %arg4[%c0_26, %c0_27, %c0_28, %c0_29] : memref<3x3x128x128xbf16, #tpu.memory_space<vmem>>, vector<1x1x128x128xbf16>
    %26 = vector.shape_cast %25 : vector<1x1x128x128xbf16> to vector<128x128xbf16>
    %cst_30 = arith.constant dense<0.000000e+00> : vector<64x128xf32>
    %27 = tpu.matmul %24, %26, %cst_30 {dimension_numbers = #tpu.dot_dimension_numbers<[1], [0], [0], [1], [0, 0, 1, 1], [], []>} : vector<64x128xbf16>, vector<128x128xbf16>, vector<64x128xf32> -> vector<64x128xf32>
    %c0_31 = arith.constant 0 : index
    %c1_32 = arith.constant 1 : index
    %c0_33 = arith.constant 0 : index
    %28 = vector.load %arg10[%c0_31, %c1_32, %c0_33] : memref<10x16x128xbf16, #tpu.memory_space<vmem>>, vector<8x8x128xbf16>
    %29 = vector.shape_cast %28 : vector<8x8x128xbf16> to vector<64x128xbf16>
    %c0_34 = arith.constant 0 : index
    %c1_35 = arith.constant 1 : index
    %c0_36 = arith.constant 0 : index
    %c0_37 = arith.constant 0 : index
    %30 = vector.load %arg4[%c0_34, %c1_35, %c0_36, %c0_37] : memref<3x3x128x128xbf16, #tpu.memory_space<vmem>>, vector<1x1x128x128xbf16>
    %31 = vector.shape_cast %30 : vector<1x1x128x128xbf16> to vector<128x128xbf16>
    %cst_38 = arith.constant dense<0.000000e+00> : vector<64x128xf32>
    %32 = tpu.matmul %29, %31, %cst_38 {dimension_numbers = #tpu.dot_dimension_numbers<[1], [0], [0], [1], [0, 0, 1, 1], [], []>} : vector<64x128xbf16>, vector<128x128xbf16>, vector<64x128xf32> -> vector<64x128xf32>
    %33 = arith.addf %27, %32 : vector<64x128xf32>
    %c0_39 = arith.constant 0 : index
    %c2 = arith.constant 2 : index
    %c0_40 = arith.constant 0 : index
    %34 = vector.load %arg10[%c0_39, %c2, %c0_40] : memref<10x16x128xbf16, #tpu.memory_space<vmem>>, vector<8x8x128xbf16>
    %35 = vector.shape_cast %34 : vector<8x8x128xbf16> to vector<64x128xbf16>
    %c0_41 = arith.constant 0 : index
    %c2_42 = arith.constant 2 : index
    %c0_43 = arith.constant 0 : index
    %c0_44 = arith.constant 0 : index
    %36 = vector.load %arg4[%c0_41, %c2_42, %c0_43, %c0_44] : memref<3x3x128x128xbf16, #tpu.memory_space<vmem>>, vector<1x1x128x128xbf16>
    %37 = vector.shape_cast %36 : vector<1x1x128x128xbf16> to vector<128x128xbf16>
    %cst_45 = arith.constant dense<0.000000e+00> : vector<64x128xf32>
    %38 = tpu.matmul %35, %37, %cst_45 {dimension_numbers = #tpu.dot_dimension_numbers<[1], [0], [0], [1], [0, 0, 1, 1], [], []>} : vector<64x128xbf16>, vector<128x128xbf16>, vector<64x128xf32> -> vector<64x128xf32>
    %39 = arith.addf %33, %38 : vector<64x128xf32>
    %c1_46 = arith.constant 1 : index
    %c0_47 = arith.constant 0 : index
    %c0_48 = arith.constant 0 : index
    %40 = vector.load %arg10[%c1_46, %c0_47, %c0_48] : memref<10x16x128xbf16, #tpu.memory_space<vmem>>, vector<8x8x128xbf16>
    %41 = vector.shape_cast %40 : vector<8x8x128xbf16> to vector<64x128xbf16>
    %c1_49 = arith.constant 1 : index
    %c0_50 = arith.constant 0 : index
    %c0_51 = arith.constant 0 : index
    %c0_52 = arith.constant 0 : index
    %42 = vector.load %arg4[%c1_49, %c0_50, %c0_51, %c0_52] : memref<3x3x128x128xbf16, #tpu.memory_space<vmem>>, vector<1x1x128x128xbf16>
    %43 = vector.shape_cast %42 : vector<1x1x128x128xbf16> to vector<128x128xbf16>
    %cst_53 = arith.constant dense<0.000000e+00> : vector<64x128xf32>
    %44 = tpu.matmul %41, %43, %cst_53 {dimension_numbers = #tpu.dot_dimension_numbers<[1], [0], [0], [1], [0, 0, 1, 1], [], []>} : vector<64x128xbf16>, vector<128x128xbf16>, vector<64x128xf32> -> vector<64x128xf32>
    %45 = arith.addf %39, %44 : vector<64x128xf32>
    %c1_54 = arith.constant 1 : index
    %c1_55 = arith.constant 1 : index
    %c0_56 = arith.constant 0 : index
    %46 = vector.load %arg10[%c1_54, %c1_55, %c0_56] : memref<10x16x128xbf16, #tpu.memory_space<vmem>>, vector<8x8x128xbf16>
    %47 = vector.shape_cast %46 : vector<8x8x128xbf16> to vector<64x128xbf16>
    %c1_57 = arith.constant 1 : index
    %c1_58 = arith.constant 1 : index
    %c0_59 = arith.constant 0 : index
    %c0_60 = arith.constant 0 : index
    %48 = vector.load %arg4[%c1_57, %c1_58, %c0_59, %c0_60] : memref<3x3x128x128xbf16, #tpu.memory_space<vmem>>, vector<1x1x128x128xbf16>
    %49 = vector.shape_cast %48 : vector<1x1x128x128xbf16> to vector<128x128xbf16>
    %cst_61 = arith.constant dense<0.000000e+00> : vector<64x128xf32>
    %50 = tpu.matmul %47, %49, %cst_61 {dimension_numbers = #tpu.dot_dimension_numbers<[1], [0], [0], [1], [0, 0, 1, 1], [], []>} : vector<64x128xbf16>, vector<128x128xbf16>, vector<64x128xf32> -> vector<64x128xf32>
    %51 = arith.addf %45, %50 : vector<64x128xf32>
    %c1_62 = arith.constant 1 : index
    %c2_63 = arith.constant 2 : index
    %c0_64 = arith.constant 0 : index
    %52 = vector.load %arg10[%c1_62, %c2_63, %c0_64] : memref<10x16x128xbf16, #tpu.memory_space<vmem>>, vector<8x8x128xbf16>
    %53 = vector.shape_cast %52 : vector<8x8x128xbf16> to vector<64x128xbf16>
    %c1_65 = arith.constant 1 : index
    %c2_66 = arith.constant 2 : index
    %c0_67 = arith.constant 0 : index
    %c0_68 = arith.constant 0 : index
    %54 = vector.load %arg4[%c1_65, %c2_66, %c0_67, %c0_68] : memref<3x3x128x128xbf16, #tpu.memory_space<vmem>>, vector<1x1x128x128xbf16>
    %55 = vector.shape_cast %54 : vector<1x1x128x128xbf16> to vector<128x128xbf16>
    %cst_69 = arith.constant dense<0.000000e+00> : vector<64x128xf32>
    %56 = tpu.matmul %53, %55, %cst_69 {dimension_numbers = #tpu.dot_dimension_numbers<[1], [0], [0], [1], [0, 0, 1, 1], [], []>} : vector<64x128xbf16>, vector<128x128xbf16>, vector<64x128xf32> -> vector<64x128xf32>
    %57 = arith.addf %51, %56 : vector<64x128xf32>
    %c2_70 = arith.constant 2 : index
    %c0_71 = arith.constant 0 : index
    %c0_72 = arith.constant 0 : index
    %58 = vector.load %arg10[%c2_70, %c0_71, %c0_72] : memref<10x16x128xbf16, #tpu.memory_space<vmem>>, vector<8x8x128xbf16>
    %59 = vector.shape_cast %58 : vector<8x8x128xbf16> to vector<64x128xbf16>
    %c2_73 = arith.constant 2 : index
    %c0_74 = arith.constant 0 : index
    %c0_75 = arith.constant 0 : index
    %c0_76 = arith.constant 0 : index
    %60 = vector.load %arg4[%c2_73, %c0_74, %c0_75, %c0_76] : memref<3x3x128x128xbf16, #tpu.memory_space<vmem>>, vector<1x1x128x128xbf16>
    %61 = vector.shape_cast %60 : vector<1x1x128x128xbf16> to vector<128x128xbf16>
    %cst_77 = arith.constant dense<0.000000e+00> : vector<64x128xf32>
    %62 = tpu.matmul %59, %61, %cst_77 {dimension_numbers = #tpu.dot_dimension_numbers<[1], [0], [0], [1], [0, 0, 1, 1], [], []>} : vector<64x128xbf16>, vector<128x128xbf16>, vector<64x128xf32> -> vector<64x128xf32>
    %63 = arith.addf %57, %62 : vector<64x128xf32>
    %c2_78 = arith.constant 2 : index
    %c1_79 = arith.constant 1 : index
    %c0_80 = arith.constant 0 : index
    %64 = vector.load %arg10[%c2_78, %c1_79, %c0_80] : memref<10x16x128xbf16, #tpu.memory_space<vmem>>, vector<8x8x128xbf16>
    %65 = vector.shape_cast %64 : vector<8x8x128xbf16> to vector<64x128xbf16>
    %c2_81 = arith.constant 2 : index
    %c1_82 = arith.constant 1 : index
    %c0_83 = arith.constant 0 : index
    %c0_84 = arith.constant 0 : index
    %66 = vector.load %arg4[%c2_81, %c1_82, %c0_83, %c0_84] : memref<3x3x128x128xbf16, #tpu.memory_space<vmem>>, vector<1x1x128x128xbf16>
    %67 = vector.shape_cast %66 : vector<1x1x128x128xbf16> to vector<128x128xbf16>
    %cst_85 = arith.constant dense<0.000000e+00> : vector<64x128xf32>
    %68 = tpu.matmul %65, %67, %cst_85 {dimension_numbers = #tpu.dot_dimension_numbers<[1], [0], [0], [1], [0, 0, 1, 1], [], []>} : vector<64x128xbf16>, vector<128x128xbf16>, vector<64x128xf32> -> vector<64x128xf32>
    %69 = arith.addf %63, %68 : vector<64x128xf32>
    %c2_86 = arith.constant 2 : index
    %c2_87 = arith.constant 2 : index
    %c0_88 = arith.constant 0 : index
    %70 = vector.load %arg10[%c2_86, %c2_87, %c0_88] : memref<10x16x128xbf16, #tpu.memory_space<vmem>>, vector<8x8x128xbf16>
    %71 = vector.shape_cast %70 : vector<8x8x128xbf16> to vector<64x128xbf16>
    %c2_89 = arith.constant 2 : index
    %c2_90 = arith.constant 2 : index
    %c0_91 = arith.constant 0 : index
    %c0_92 = arith.constant 0 : index
    %72 = vector.load %arg4[%c2_89, %c2_90, %c0_91, %c0_92] : memref<3x3x128x128xbf16, #tpu.memory_space<vmem>>, vector<1x1x128x128xbf16>
    %73 = vector.shape_cast %72 : vector<1x1x128x128xbf16> to vector<128x128xbf16>
    %cst_93 = arith.constant dense<0.000000e+00> : vector<64x128xf32>
    %74 = tpu.matmul %71, %73, %cst_93 {dimension_numbers = #tpu.dot_dimension_numbers<[1], [0], [0], [1], [0, 0, 1, 1], [], []>} : vector<64x128xbf16>, vector<128x128xbf16>, vector<64x128xf32> -> vector<64x128xf32>
    %75 = arith.addf %69, %74 : vector<64x128xf32>
    %c0_94 = arith.constant 0 : index
    %c0_95 = arith.constant 0 : index
    %76 = vector.load %arg5[%c0_94, %c0_95] : memref<1x128xf32, #tpu.memory_space<vmem>>, vector<1x128xf32>
    %77 = vector.broadcast %76 : vector<1x128xf32> to vector<64x128xf32>
    %78 = arith.addf %75, %77 : vector<64x128xf32>
    %cst_96 = arith.constant 0.000000e+00 : f32
    %79 = vector.broadcast %cst_96 : f32 to vector<64x128xf32>
    %80 = arith.maximumf %78, %79 : vector<64x128xf32>
    %81 = arith.truncf %80 : vector<64x128xf32> to vector<64x128xbf16>
    %c0_97 = arith.constant 0 : index
    %c0_98 = arith.constant 0 : index
    %82 = vector.load %arg6[%c0_97, %c0_98] : memref<128x128xbf16, #tpu.memory_space<vmem>>, vector<128x128xbf16>
    %cst_99 = arith.constant dense<0.000000e+00> : vector<64x128xf32>
    %83 = tpu.matmul %81, %82, %cst_99 {dimension_numbers = #tpu.dot_dimension_numbers<[1], [0], [0], [1], [0, 0, 1, 1], [], []>} : vector<64x128xbf16>, vector<128x128xbf16>, vector<64x128xf32> -> vector<64x128xf32>
    %c0_100 = arith.constant 0 : index
    %c0_101 = arith.constant 0 : index
    %84 = vector.load %arg8[%c0_100, %c0_101] : memref<128x128xbf16, #tpu.memory_space<vmem>>, vector<128x128xbf16>
    %cst_102 = arith.constant dense<0.000000e+00> : vector<64x128xf32>
    %85 = tpu.matmul %2, %84, %cst_102 {dimension_numbers = #tpu.dot_dimension_numbers<[1], [0], [0], [1], [0, 0, 1, 1], [], []>} : vector<64x128xbf16>, vector<128x128xbf16>, vector<64x128xf32> -> vector<64x128xf32>
    %86 = arith.addf %83, %85 : vector<64x128xf32>
    %c0_103 = arith.constant 0 : index
    %c0_104 = arith.constant 0 : index
    %87 = vector.load %arg7[%c0_103, %c0_104] : memref<1x128xf32, #tpu.memory_space<vmem>>, vector<1x128xf32>
    %88 = vector.broadcast %87 : vector<1x128xf32> to vector<64x128xf32>
    %89 = arith.addf %86, %88 : vector<64x128xf32>
    %cst_105 = arith.constant 0.000000e+00 : f32
    %90 = vector.broadcast %cst_105 : f32 to vector<64x128xf32>
    %91 = arith.maximumf %89, %90 : vector<64x128xf32>
    %92 = vector.shape_cast %91 : vector<64x128xf32> to vector<8x8x128xf32>
    %c0_106 = arith.constant 0 : index
    %c0_107 = arith.constant 0 : index
    %c0_108 = arith.constant 0 : index
    %c0_109 = arith.constant 0 : index
    %93 = vector.load %arg9[%c0_106, %c0_107, %c0_108, %c0_109] : memref<1x8x8x128xf32, #tpu.memory_space<vmem>>, vector<1x8x8x128xf32>
    %94 = vector.shape_cast %93 : vector<1x8x8x128xf32> to vector<8x8x128xf32>
    %95 = vector.shape_cast %92 : vector<8x8x128xf32> to vector<1x8x8x128xf32>
    tpu.vector_store %arg9[%c0_106, %c0_107, %c0_108, %c0_109], %95 {strides = array<i32>} : memref<1x8x8x128xf32, #tpu.memory_space<vmem>>, vector<1x8x8x128xf32>,
    return
  }
  func.func @transform_0(%arg0: i32) -> (i32, i32, i32, i32) {
    %c0_i32 = arith.constant 0 : i32
    %c0_i32_0 = arith.constant 0 : i32
    %c0_i32_1 = arith.constant 0 : i32
    %c0_i32_2 = arith.constant 0 : i32
    return %arg0, %c0_i32, %c0_i32_0, %c0_i32_1 : i32, i32, i32, i32
  }
  func.func @transform_1(%arg0: i32) -> (i32, i32) {
    %c0_i32 = arith.constant 0 : i32
    %c0_i32_0 = arith.constant 0 : i32
    %c0_i32_1 = arith.constant 0 : i32
    return %c0_i32, %c0_i32_0 : i32, i32
  }
  func.func @transform_2(%arg0: i32) -> (i32, i32) {
    %c0_i32 = arith.constant 0 : i32
    %c0_i32_0 = arith.constant 0 : i32
    %c0_i32_1 = arith.constant 0 : i32
    return %c0_i32, %c0_i32_0 : i32, i32
  }
  func.func @transform_3(%arg0: i32) -> (i32, i32, i32, i32) {
    %c0_i32 = arith.constant 0 : i32
    %c0_i32_0 = arith.constant 0 : i32
    %c0_i32_1 = arith.constant 0 : i32
    %c0_i32_2 = arith.constant 0 : i32
    %c0_i32_3 = arith.constant 0 : i32
    return %c0_i32, %c0_i32_0, %c0_i32_1, %c0_i32_2 : i32, i32, i32, i32
  }
  func.func @transform_4(%arg0: i32) -> (i32, i32) {
    %c0_i32 = arith.constant 0 : i32
    %c0_i32_0 = arith.constant 0 : i32
    %c0_i32_1 = arith.constant 0 : i32
    return %c0_i32, %c0_i32_0 : i32, i32
  }
  func.func @transform_5(%arg0: i32) -> (i32, i32) {
    %c0_i32 = arith.constant 0 : i32
    %c0_i32_0 = arith.constant 0 : i32
    %c0_i32_1 = arith.constant 0 : i32
    return %c0_i32, %c0_i32_0 : i32, i32
  }
  func.func @transform_6(%arg0: i32) -> (i32, i32) {
    %c0_i32 = arith.constant 0 : i32
    %c0_i32_0 = arith.constant 0 : i32
    %c0_i32_1 = arith.constant 0 : i32
    return %c0_i32, %c0_i32_0 : i32, i32
  }
  func.func @transform_7(%arg0: i32) -> (i32, i32) {
    %c0_i32 = arith.constant 0 : i32
    %c0_i32_0 = arith.constant 0 : i32
    %c0_i32_1 = arith.constant 0 : i32
    return %c0_i32, %c0_i32_0 : i32, i32
  }
  func.func @transform_8(%arg0: i32) -> (i32, i32, i32, i32) {
    %c0_i32 = arith.constant 0 : i32
    %c0_i32_0 = arith.constant 0 : i32
    %c0_i32_1 = arith.constant 0 : i32
    %c0_i32_2 = arith.constant 0 : i32
    return %arg0, %c0_i32, %c0_i32_0, %c0_i32_1 : i32, i32, i32, i32
  }
}

</mosaic_0001>

<bundles_post_ra>
// kernel: bottleneck_pallas.1
= control target key start
LH: loop header
LB: loop body
LE: loop exit
PB: predicated region body
PF: predicated region fallthrough
CT: control target
= control target key end

     0   :  { %s3986_s27 = smov 0   ;;  %s4722_s0 = inlined_call_operand.vmem [shape: bf16[2,8,8,128], index: 0, kind: input, shape index: {}]   ;;  %s4723_s1 = inlined_call_operand.vmem [shape: bf16[128,128], index: 1, kind: input, shape index: {}]   ;;  %s4724_s2 = inlined_call_operand.vmem [shape: f32[1,128], index: 2, kind: input, shape index: {}]   ;;  %s4725_s3 = inlined_call_operand.vmem [shape: bf16[3,3,128,128], index: 3, kind: input, shape index: {}]   ;;  %s4726_s4 = inlined_call_operand.vmem [shape: f32[1,128], index: 4, kind: input, shape index: {}]   ;;  %s4727_s5 = inlined_call_operand.vmem [shape: bf16[128,128], index: 5, kind: input, shape index: {}]   ;;  %s4728_s6 = inlined_call_operand.vmem [shape: f32[1,128], index: 6, kind: input, shape index: {}]   ;;  %s4729_s7 = inlined_call_operand.vmem [shape: bf16[128,128], index: 7, kind: input, shape index: {}]   ;;  %s4730_s8 = inlined_call_operand.vmem [shape: f32[2,8,8,128], index: 8, kind: output, shape index: {}]  }
   0x1 LB: > { %s3055_s28 = sadd.s32 4294967295, %s3938_s27   ;;  %p3059_p0 = scmp.ge.s32.totalorder %s3938_s27, 1  ;;  %s3938_s27 = sphi %s3986_s27, %s18_s27  }
   0x2   : > { %p262_p1 = scmp.lt.s32.totalorder %s3938_s27, 3 }
   0x4   : > { %p263_p2 = pnand %p3059_p0, %p262_p1 }
   0x6   : > { %266 = sbr.rel (%p263_p2) target bundleno = 831 (0x33f), region = 52 }
   0xb   : > { %v3816_v0 = vld [vmem:[%s4723_s1 + $0x38] sm:$0xff]   ;;  %p296_p3 = scmp.lt.s32.totalorder %s3055_s28, 1  ;;  %v3817_v1 = vld [vmem:[%s4723_s1 + $0x30] sm:$0xff]   ;;  %v3818_v2 = vld [vmem:[%s4723_s1 + $0x28] sm:$0xff]   ;;  %vm488_vm0 = vcmask 1040384   ;;  %v3940_v34 = vmov 0  }
   0xc   : > { %3519 = vmatprep.subr.bf16.mxu0 %v3816_v0  ;;  %v3819_v3 = vld [vmem:[%s4723_s1 + $0x20] sm:$0xff]   ;;  %v3820_v5 = vld [vmem:[%s4723_s1 + $0x18] sm:$0xff]   ;;  %v3821_v6 = vld [vmem:[%s4723_s1 + $0x10] sm:$0xff]   ;;  %vm489_vm1 = vsmask.f32 256  ;;  %vm666_vm5 = vcmask 1043456  }
   0xd   : > { %s4752_s28 = smov (!%p296_p3, %s3055_s28), 1  ;;  %3520 = vmatpush3.bf16.msra.mxu0 %v3816_v0  ;;  %v3822_v7 = vld [vmem:[%s4723_s1 + $0x8] sm:$0xff]   ;;  %v3823_v8 = vld [vmem:[%s4723_s1] sm:$0xff]   ;;  %v3828_v9 = vld [vmem:[%s4725_s3 + $0x38] sm:$0xff]   ;;  %vm521_vm2 = vsmask.f32 7938 }
   0xe   : > { %3521 = vmatprep.subr.bf16.mxu0 %v3817_v1  ;;  %s3365_s13 = sshll.u32 %s4752_s28, 5  ;;  %v3829_v13 = vld [vmem:[%s4725_s3 + $0x30] sm:$0xff]   ;;  %vm4036_vm3 = vmand %vm488_vm0, %vm489_vm1  ;;  %v500_v15 = vld [vmem:[#allocation2 + $0x18] sm:$0x1]  ;;  %483 = vst [vmem:[#allocation2] sm:$0xf] %v3940_v34 }
   0xf   : > { %s4009_s16 = scalar_lea.vmem %s4722_s0, %s3365_s13  ;;  %v532_v16 = vld [vmem:[#allocation2 + $0x1c] sm:$0x1]  ;;  %v501_v17 = vsel %vm4036_vm3, 0, %v500_v15  ;;  %vm4043_vm4 = vmand %vm488_vm0, %vm521_vm2  ;;  %v3830_v19 = vld [vmem:[%s4725_s3 + $0x28] sm:$0xff]   ;;  %484 = vst [vmem:[#allocation2 + $0x4] sm:$0xf] %v3940_v34 }
  0x10   : > { %v3824_v4 = vld [vmem:[%s4009_s16] sm:$0xff]   ;;  %v3825_v10 = vld [vmem:[%s4009_s16 + $0x8] sm:$0xff]   ;;  %v3826_v11 = vld [vmem:[%s4009_s16 + $0x10] sm:$0xff]   ;;  %502 = vst [vmem:[#allocation2 + $0x18] sm:$0x1] %v501_v17  ;;  %v533_v20 = vsel %vm4043_vm4, 0, %v532_v16 }
  0x11   : > { %3522 = vmatpush3.bf16.msra.mxu0 %v3817_v1  ;;  %3535 = vmatprep.mubr.bf16.mxu0 %v3824_v4  ;;  %v3827_v12 = vld [vmem:[%s4009_s16 + $0x18] sm:$0xff]   ;;  %v494_v21 = vld [vmem:[#allocation2 + $0x8] sm:$0x1]  ;;  %v526_v22 = vld [vmem:[#allocation2 + $0xc] sm:$0x1]  ;;  %vm1170_vm10 = vcmask 1042432  }
  0x12   : > { %3523 = vmatprep.subr.bf16.mxu0 %v3818_v2  ;;  %v3831_v23 = vld [vmem:[%s4725_s3 + $0x78] sm:$0xff]   ;;  %534 = vst [vmem:[#allocation2 + $0x1c] sm:$0x1] %v533_v20  ;;  %v495_v24 = vsel %vm4036_vm3, 0, %v494_v21  ;;  %v527_v25 = vsel %vm4043_vm4, 0, %v526_v22  ;;  %v3832_v30 = vld [vmem:[%s4725_s3 + $0x20] sm:$0xff]   ;;  %vm4162_vm6 = vmand %vm666_vm5, %vm521_vm2 }
  0x13   : > { %496 = vst [vmem:[#allocation2 + $0x8] sm:$0x1] %v495_v24  ;;  %528 = vst [vmem:[#allocation2 + $0xc] sm:$0x1] %v527_v25  ;;  %v503_v26 = vld [vmem:[#allocation2 + $0x20] sm:$0x1]  ;;  %3543 = vmatprep.subr.bf16.mxu1 %v3831_v23 }
  0x14   : > { %v535_v27 = vld [vmem:[#allocation2 + $0x24] sm:$0x1]  ;;  %v504_v28 = vsel %vm4036_vm3, 0, %v503_v26  ;;  %3544 = vmatpush3.bf16.msra.mxu1 %v3831_v23  ;;  %v497_v31 = vld [vmem:[#allocation2 + $0x10] sm:$0x1]  ;;  %v3834_v37 = vld [vmem:[%s4725_s3 + $0x18] sm:$0xff]  }
  0x15   : > { %3524 = vmatpush3.bf16.msra.mxu0 %v3818_v2  ;;  %v536_v29 = vsel %vm4043_vm4, 0, %v535_v27  ;;  %505 = vst [vmem:[#allocation2 + $0x20] sm:$0x1] %v504_v28  ;;  %v529_v32 = vld [vmem:[#allocation2 + $0x14] sm:$0x1]  ;;  %v498_v35 = vsel %vm4036_vm3, 0, %v497_v31 }
  0x16   : > { %3525 = vmatprep.subr.bf16.mxu0 %v3819_v3  ;;  %537 = vst [vmem:[#allocation2 + $0x24] sm:$0x1] %v536_v29  ;;  %v3833_v33 = vld [vmem:[%s4725_s3 + $0x70] sm:$0xff]   ;;  %486 = vst [vmem:[#allocation2 + $0x48] sm:$0xf] %v3940_v34  ;;  %v530_v36 = vsel %vm4043_vm4, 0, %v529_v32 }
  0x17   : > { %487 = vst [vmem:[#allocation2 + $0x4c] sm:$0xf] %v3940_v34  ;;  %499 = vst [vmem:[#allocation2 + $0x10] sm:$0x1] %v498_v35  ;;  %3545 = vmatprep.subr.bf16.mxu1 %v3833_v33  ;;  %v506_v38 = vld [vmem:[#allocation2 + $0x28] sm:$0x1] }
  0x18   : > { %531 = vst [vmem:[#allocation2 + $0x14] sm:$0x1] %v530_v36  ;;  %3546 = vmatpush3.bf16.msra.mxu1 %v3833_v33  ;;  %v538_v39 = vld [vmem:[#allocation2 + $0x2c] sm:$0x1]  ;;  %v507_v41 = vsel %vm4036_vm3, 0, %v506_v38  ;;  %v3836_v46 = vld [vmem:[%s4725_s3 + $0x10] sm:$0xff]  }
  0x19   : > { %3526 = vmatpush3.bf16.msra.mxu0 %v3819_v3  ;;  %v3835_v40 = vld [vmem:[%s4725_s3 + $0x68] sm:$0xff]   ;;  %v539_v42 = vsel %vm4043_vm4, 0, %v538_v39  ;;  %508 = vst [vmem:[#allocation2 + $0x28] sm:$0x1] %v507_v41  ;;  %v491_v43 = vld [vmem:[#allocation2] sm:$0x1] }
  0x1a   : > { %3527 = vmatprep.subr.bf16.mxu0 %v3820_v5  ;;  %540 = vst [vmem:[#allocation2 + $0x2c] sm:$0x1] %v539_v42  ;;  %3547 = vmatprep.subr.bf16.mxu1 %v3835_v40  ;;  %v523_v44 = vld [vmem:[#allocation2 + $0x4] sm:$0x1]  ;;  %v512_v45 = vld [vmem:[#allocation2 + $0x38] sm:$0x1] }
  0x1b   : > { %v492_v47 = vsel %vm4036_vm3, 0, %v491_v43  ;;  %v524_v48 = vsel %vm4043_vm4, 0, %v523_v44  ;;  %v513_v49 = vsel %vm4036_vm3, 0, %v512_v45  ;;  %v3837_v50 = vld [vmem:[%s4725_s3 + $0x60] sm:$0xff]   ;;  %v509_v51 = vld [vmem:[#allocation2 + $0x30] sm:$0x1] }
  0x1c   : > { %3548 = vmatpush3.bf16.msra.mxu1 %v3835_v40  ;;  %493 = vst [vmem:[#allocation2] sm:$0x1] %v492_v47  ;;  %525 = vst [vmem:[#allocation2 + $0x4] sm:$0x1] %v524_v48  ;;  %v544_v52 = vld [vmem:[#allocation2 + $0x3c] sm:$0x1] }
  0x1d   : > { %3528 = vmatpush3.bf16.msra.mxu0 %v3820_v5  ;;  %514 = vst [vmem:[#allocation2 + $0x38] sm:$0x1] %v513_v49  ;;  %v510_v53 = vsel %vm4036_vm3, 0, %v509_v51  ;;  %3549 = vmatprep.subr.bf16.mxu1 %v3837_v50  ;;  %v545_v54 = vsel %vm4043_vm4, 0, %v544_v52  ;;  %v3838_v55 = vld [vmem:[%s4725_s3 + $0x8] sm:$0xff]   ;;  %v3839_v56 = vld [vmem:[%s4725_s3 + $0x58] sm:$0xff]  }
  0x1e   : > { %3529 = vmatprep.subr.bf16.mxu0 %v3821_v6  ;;  %511 = vst [vmem:[#allocation2 + $0x30] sm:$0x1] %v510_v53  ;;  %546 = vst [vmem:[#allocation2 + $0x3c] sm:$0x1] %v545_v54  ;;  %v541_v57 = vld [vmem:[#allocation2 + $0x34] sm:$0x1] }
  0x1f   : > { %v515_v58 = vld [vmem:[#allocation2 + $0x40] sm:$0x1]  ;;  %v542_v59 = vsel %vm4043_vm4, 0, %v541_v57  ;;  %v547_v61 = vld [vmem:[#allocation2 + $0x44] sm:$0x1]  ;;  %v3841_v0 = vld [vmem:[%s4725_s3 + $0x50] sm:$0xff]  }
  0x20   : > { %3550 = vmatpush3.bf16.msra.mxu1 %v3837_v50  ;;  %v516_v60 = vsel %vm4036_vm3, 0, %v515_v58  ;;  %543 = vst [vmem:[#allocation2 + $0x34] sm:$0x1] %v542_v59  ;;  %v3840_v62 = vld [vmem:[%s4725_s3] sm:$0xff]   ;;  %v548_v63 = vsel %vm4043_vm4, 0, %v547_v61  ;;  %v4120_v1 = vld [vmem:[%s4725_s3 + $0xf8] sm:$0xff]  }
  0x21   : > { %3530 = vmatpush3.bf16.msra.mxu0 %v3821_v6  ;;  %3551 = vmatprep.subr.bf16.mxu1 %v3839_v56  ;;  %517 = vst [vmem:[#allocation2 + $0x40] sm:$0x1] %v516_v60  ;;  %549 = vst [vmem:[#allocation2 + $0x44] sm:$0x1] %v548_v63  ;;  %v3844_v2 = vld [vmem:[%s4725_s3 + $0x48] sm:$0xff]   ;;  %v3847_v3 = vld [vmem:[%s4725_s3 + $0x40] sm:$0xff]  }
  0x22   : > { %3531 = vmatprep.subr.bf16.mxu0 %v3822_v7  ;;  %v4132_v4 = vld [vmem:[%s4725_s3 + $0xb8] sm:$0xff]   ;;  %v518_v5 = vld [vmem:[#allocation2 + $0x48] sm:$0x1]  ;;  %v671_v51 = vld [vmem:[#allocation2 + $0xc] sm:$0x1]  ;;  %vm1171_vm11 = vcmask 1046532  }
  0x23   : > { %v519_v6 = vsel %vm4036_vm3, 0, %v518_v5  ;;  %v4155_v25 = vld [vmem:[#allocation2 + $0x4] sm:$0x1]  ;;  %v680_v36 = vld [vmem:[#allocation2 + $0x18] sm:$0xf]  ;;  %vm4295_vm12 = vmor %vm1170_vm10, %vm1171_vm11  ;;  %s3366_s18 = sshll.u32 %s4752_s28, 6 }
  0x24   : > { %3552 = vmatpush3.bf16.msra.mxu1 %v3839_v56  ;;  %520 = vst [vmem:[#allocation2 + $0x48] sm:$0x1] %v519_v6  ;;  %v761_v27 = vshll.u32 %v4155_v25, 16  ;;  %v683_v40 = vld [vmem:[#allocation2 + $0x1c] sm:$0x1]  ;;  %s4709_s21 = scalar_lea.vmem %s4730_s8, %s3366_s18 }
  0x25   : > { %3532 = vmatpush3.bf16.msra.mxu0 %v3822_v7  ;;  %3553 = vmatprep.subr.bf16.mxu1 %v3841_v0  ;;  %v550_v7 = vld [vmem:[#allocation2 + $0x4c] sm:$0x1]  ;;  %v668_v50 = vld [vmem:[#allocation2 + $0x8] sm:$0xf]  ;;  %v686_v6 = vld [vmem:[#allocation2 + $0x20] sm:$0xf] }
  0x26   : > { %3533 = vmatprep.subr.bf16.mxu0 %v3823_v8  ;;  %v4167_v45 = vrot.slane %v761_v27, 5  ;;  %vm748_vm7 = vsmask.f32 3328  ;;  %vm749_vm8 = vsmask.f32 7440 }
  0x27   : > { %vm4215_vm9 = vmor %vm748_vm7, %vm749_vm8 }
  0x28   : > { %3554 = vmatpush3.bf16.msra.mxu1 %v3841_v0 }
  0x29   : > { %3534 = vmatpush3.bf16.msra.mxu0 %v3823_v8  ;;  %3555 = vmatprep.subr.bf16.mxu1 %v3844_v2  ;;  %v551_v8 = vsel %vm4043_vm4, 0, %v550_v7  ;;  %v689_v7 = vld [vmem:[#allocation2 + $0x24] sm:$0x1] }
  0x2a   : > { %3567 = vmatprep.subr.bf16.mxu0 %v3828_v9  ;;  %552 = vst [vmem:[#allocation2 + $0x4c] sm:$0x1] %v551_v8 }
  0x2c   : > { %3536 = vmatmul.mubr.bf16.vlgmr.msra.gmra.mxu0 %v3825_v10  ;;  %3556 = vmatpush3.bf16.msra.mxu1 %v3844_v2  ;;  %v4144_v10 = vld [vmem:[%s4724_s2] ss:$0 sm:$0xff] }
  0x2d   : > { %3539 = vmatprep.mubr.bf16.mxu0 %v3826_v11  ;;  %3568 = vmatpush3.bf16.msra.mxu0 %v3828_v9  ;;  %v4139_v9 = vld [vmem:[#allocation2] sm:$0xf] }
  0x2e   : > { %3569 = vmatprep.subr.bf16.mxu0 %v3829_v13  ;;  %3557 = vmatprep.subr.bf16.mxu1 %v3847_v3 }
  0x30   : > { %3558 = vmatpush3.bf16.msra.mxu1 %v3847_v3 }
  0x31   : > { %3570 = vmatpush3.bf16.msra.mxu0 %v3829_v13  ;;  %3591 = vmatprep.subr.bf16.mxu1 %v4132_v4  ;;  %v755_v13 = vshll.u32 %v4139_v9, 16 }
  0x32   : > { %3571 = vmatprep.subr.bf16.mxu0 %v3830_v19 }
  0x33   : > { %v4152_v21 = vrot.slane %v755_v13, 5 }
  0x34   : > { %3540 = vmatmul.mubr.bf16.gmra.mxu0 %v3827_v12  ;;  %v752_v12 = vshrl.u32 %v4139_v9, 16 }
  0x35   : > { %3572 = vmatpush3.bf16.msra.mxu0 %v3830_v19 }
  0x36   : > { %3573 = vmatprep.subr.bf16.mxu0 %v3832_v30  ;;  %v4150_v20 = vrot.slane %v752_v12, 4 }
  0x38   : > { %v758_v33 = vor.u32 %v4152_v21, %v4150_v20 }
  0x39   : > { %3574 = vmatpush3.bf16.msra.mxu0 %v3832_v30 }
  0x3a   : > { %3575 = vmatprep.subr.bf16.mxu0 %v3834_v37 }
  0x3d   : > { %3576 = vmatpush3.bf16.msra.mxu0 %v3834_v37 }
  0x3e   : > { %3577 = vmatprep.subr.bf16.mxu0 %v3836_v46 }
  0x41   : > { %3578 = vmatpush3.bf16.msra.mxu0 %v3836_v46 }
  0x42   : > { %3579 = vmatprep.subr.bf16.mxu0 %v3838_v55 }
  0x45   : > { %3580 = vmatpush3.bf16.msra.mxu0 %v3838_v55 }
  0x46   : > { %3581 = vmatprep.subr.bf16.mxu0 %v3840_v62 }
  0x49   : > { %3582 = vmatpush3.bf16.msra.mxu0 %v3840_v62 }
  0x4a   : > { %3615 = vmatprep.subr.bf16.mxu0 %v4120_v1 }
  0xec   : > { %v3537_v11 = vpop.f32.mrf.mxu0 }
  0xed   : > { %v453_v15 = vadd.f32 %v3537_v11, %v4144_v10 }
  0xee   : > { %v444_v16 = vpop.f32.mrf.mxu0 }
  0xef   : > { %v477_v17 = vmax.f32 %v453_v15, 0.0  ;;  %v445_v18 = vadd.f32 %v4144_v10, %v444_v16 }
  0xf0   : > { %v3538_v19 = vpop.f32.mrf.mxu0 }
  0xf1   : > { %v3369_v22 = vpack.c.bf16 %v477_v17, %v477_v17  ;;  %v475_v23 = vmax.f32 %v445_v18, 0.0  ;;  %v456_v24 = vadd.f32 %v3538_v19, %v4144_v10  ;;  %v674_v17 = vld [vmem:[#allocation2 + $0x10] sm:$0xf]  ;;  %v677_v18 = vld [vmem:[#allocation2 + $0x14] sm:$0x1] }
  0xf2   : > { %v447_v26 = vpop.f32.mrf.mxu0 }
  0xf3   : > { %v602_v28 = vshrl.u32 %v3369_v22, 16  ;;  %v3367_v29 = vpack.c.bf16 %v475_v23, %v475_v23  ;;  %v478_v30 = vmax.f32 %v456_v24, 0.0  ;;  %v448_v31 = vadd.f32 %v4144_v10, %v447_v26 }
  0xf4   : > { %v3541_v32 = vpop.f32.mrf.mxu0  ;;  %v605_v35 = vshll.u32 %v3369_v22, 16 }
  0xf5   : > { %v604_v34 = vrot.slane %v602_v28, 7  ;;  %v586_v37 = vshrl.u32 %v3367_v29, 16  ;;  %v3370_v38 = vpack.c.bf16 %v478_v30, %v478_v30  ;;  %v589_v41 = vshll.u32 %v3367_v29, 16 }
  0xf6   : > { %v476_v42 = vmax.f32 %v448_v31, 0.0  ;;  %v469_v43 = vadd.f32 %v3541_v32, %v4144_v10  ;;  %v460_v44 = vpop.f32.mrf.mxu0 }
  0xf7   : > { %v607_v46 = vor.u32 %v605_v35, %v604_v34  ;;  %v608_v47 = vrot.slane %v604_v34, 4  ;;  %v588_v48 = vrot.slane %v586_v37, 7  ;;  %v610_v49 = vshrl.u32 %v3370_v38, 16  ;;  %v707_v37 = vld [vmem:[#allocation2 + $0x3c] sm:$0x1] }
  0xf8   : > { %v613_v52 = vshll.u32 %v3370_v38, 16  ;;  %v3368_v53 = vpack.c.bf16 %v476_v42, %v476_v42  ;;  %v481_v54 = vmax.f32 %v469_v43, 0.0  ;;  %v461_v55 = vadd.f32 %v4144_v10, %v460_v44  ;;  %v3542_v56 = vpop.f32.mrf.mxu0  ;;  %v692_v38 = vld [vmem:[#allocation2 + $0x28] sm:$0xf] }
  0xf9   : > { %v681_v57 = vsel %vm4162_vm6, %v607_v46, %v680_v36  ;;  %v684_v58 = vsel %vm4036_vm3, %v608_v47, %v683_v40  ;;  %v591_v59 = vor.u32 %v589_v41, %v588_v48  ;;  %v592_v60 = vrot.slane %v588_v48, 4  ;;  %v704_v36 = vld [vmem:[#allocation2 + $0x38] sm:$0xf]  ;;  %v695_v48 = vld [vmem:[#allocation2 + $0x2c] sm:$0x1] }
  0xfa   : > { %682 = vst [vmem:[#allocation2 + $0x18] sm:$0xf] %v681_v57  ;;  %685 = vst [vmem:[#allocation2 + $0x1c] sm:$0x1] %v684_v58  ;;  %v612_v61 = vrot.slane %v610_v49, 7  ;;  %v594_v62 = vshrl.u32 %v3368_v53, 16  ;;  %v3373_v0 = vpack.c.bf16 %v481_v54, %v481_v54  ;;  %v463_v2 = vpop.f32.mrf.mxu0  ;;  %v472_v11 = vadd.f32 %v3542_v56, %v4144_v10 }
  0xfb   : > { %v597_v63 = vshll.u32 %v3368_v53, 16  ;;  %v669_v3 = vsel %vm4162_vm6, %v591_v59, %v668_v50  ;;  %v672_v5 = vsel %vm4036_vm3, %v592_v60, %v671_v51  ;;  %v479_v8 = vmax.f32 %v461_v55, 0.0  ;;  %v710_v54 = vld [vmem:[#allocation2 + $0x40] sm:$0xf] }
  0xfc   : > { %670 = vst [vmem:[#allocation2 + $0x8] sm:$0xf] %v669_v3  ;;  %673 = vst [vmem:[#allocation2 + $0xc] sm:$0x1] %v672_v5  ;;  %v615_v12 = vor.u32 %v613_v52, %v612_v61  ;;  %v616_v13 = vrot.slane %v612_v61, 4  ;;  %v596_v15 = vrot.slane %v594_v62, 7  ;;  %v464_v24 = vadd.f32 %v4144_v10, %v463_v2 }
  0xfd   : > { %v634_v16 = vshrl.u32 %v3373_v0, 16  ;;  %v637_v19 = vshll.u32 %v3373_v0, 16  ;;  %v3371_v22 = vpack.c.bf16 %v479_v8, %v479_v8  ;;  %v482_v23 = vmax.f32 %v472_v11, 0.0  ;;  %v698_v0 = vld [vmem:[#allocation2 + $0x30] sm:$0xf] }
  0xfe   : > { %v687_v26 = vsel %vm4162_vm6, %v615_v12, %v686_v6  ;;  %v690_v27 = vsel %vm4036_vm3, %v616_v13, %v689_v7  ;;  %v599_v28 = vor.u32 %v597_v63, %v596_v15  ;;  %v600_v29 = vrot.slane %v596_v15, 4  ;;  %v713_v63 = vld [vmem:[#allocation2 + $0x44] sm:$0x1] }
  0xff   : > { %688 = vst [vmem:[#allocation2 + $0x20] sm:$0xf] %v687_v26  ;;  %691 = vst [vmem:[#allocation2 + $0x24] sm:$0x1] %v690_v27  ;;  %v636_v30 = vrot.slane %v634_v16, 7  ;;  %v618_v31 = vshrl.u32 %v3371_v22, 16  ;;  %v3374_v34 = vpack.c.bf16 %v482_v23, %v482_v23 }
 0x100   : > { %v621_v32 = vshll.u32 %v3371_v22, 16  ;;  %v675_v35 = vsel %vm4162_vm6, %v599_v28, %v674_v17  ;;  %v678_v10 = vsel %vm4036_vm3, %v600_v29, %v677_v18  ;;  %v480_v40 = vmax.f32 %v464_v24, 0.0  ;;  %v3846_v28 = vld [vmem:[%s4725_s3 + $0xf0] sm:$0xff]  }
 0x101   : > { %v4191_v41 = vrot.slane %v758_v33, 4  ;;  %676 = vst [vmem:[#allocation2 + $0x10] sm:$0xf] %v675_v35  ;;  %679 = vst [vmem:[#allocation2 + $0x14] sm:$0x1] %v678_v10  ;;  %v639_v42 = vor.u32 %v637_v19, %v636_v30  ;;  %v640_v43 = vrot.slane %v636_v30, 4 }
 0x102   : > { %v620_v44 = vrot.slane %v618_v31, 7  ;;  %v642_v46 = vshrl.u32 %v3374_v34, 16  ;;  %v4193_v47 = vld [vmem:[#allocation2 + $0x18] sm:$0xf]  ;;  %v645_v49 = vshll.u32 %v3374_v34, 16  ;;  %v3372_v50 = vpack.c.bf16 %v480_v40, %v480_v40 }
 0x103   : > { %v794_v51 = vshrl.u32 %v4193_v47, 16  ;;  %v797_v52 = vshll.u32 %v4193_v47, 16  ;;  %v705_v20 = vsel %vm4162_vm6, %v639_v42, %v704_v36  ;;  %v708_v21 = vsel %vm4036_vm3, %v640_v43, %v707_v37  ;;  %v717_v55 = vld [vmem:[#allocation2 + $0x8] sm:$0xf]  ;;  %v4201_v56 = vld [vmem:[#allocation2 + $0xc] sm:$0x1] }
 0x104   : > { %v623_v33 = vor.u32 %v621_v32, %v620_v44  ;;  %v624_v53 = vrot.slane %v620_v44, 4  ;;  %706 = vst [vmem:[#allocation2 + $0x38] sm:$0xf] %v705_v20  ;;  %709 = vst [vmem:[#allocation2 + $0x3c] sm:$0x1] %v708_v21  ;;  %v644_v57 = vrot.slane %v642_v46, 7  ;;  %v3113_v60 = vcombine.low %v4139_v9, %v717_v55 }
 0x105   : > { %v626_v58 = vshrl.u32 %v3372_v50, 16  ;;  %v629_v59 = vshll.u32 %v3372_v50, 16  ;;  %v766_v2 = vshrl.u32 %v717_v55, 16  ;;  %v769_v3 = vshll.u32 %v717_v55, 16  ;;  %v701_v9 = vld [vmem:[#allocation2 + $0x34] sm:$0x1] }
 0x106   : > { %v693_v61 = vsel %vm4162_vm6, %v623_v33, %v692_v38  ;;  %v696_v62 = vsel %vm4036_vm3, %v624_v53, %v695_v48  ;;  %v647_v5 = vor.u32 %v645_v49, %v644_v57  ;;  %v648_v6 = vrot.slane %v644_v57, 4  ;;  %3583 = vmatprep.mubr.bf16.mxu0 %v3113_v60  ;;  %v720_v8 = vld [vmem:[#allocation2 + $0x20] sm:$0xf]  ;;  %v4240_v14 = vld [vmem:[#allocation2 + $0x1c] sm:$0x1]  ;;  %v3849_v49 = vld [vmem:[%s4725_s3 + $0xe8] sm:$0xff]  }
 0x107   : > { %694 = vst [vmem:[#allocation2 + $0x28] sm:$0xf] %v693_v61  ;;  %697 = vst [vmem:[#allocation2 + $0x2c] sm:$0x1] %v696_v62  ;;  %v628_v7 = vrot.slane %v626_v58, 7  ;;  %v775_v11 = vshll.u32 %v4201_v56, 16  ;;  %v764_v29 = vsel %vm4215_vm9, %v4191_v41, %v4167_v45 }
 0x108   : > { %v808_v12 = vshrl.u32 %v720_v8, 16  ;;  %v811_v13 = vshll.u32 %v720_v8, 16  ;;  %v768_v15 = vrot.slane %v766_v2, 4  ;;  %v771_v16 = vrot.slane %v769_v3, 5  ;;  %v718_v23 = vld [vmem:[#allocation2 + $0x10] sm:$0xf] }
 0x109   : > { %v711_v17 = vsel %vm4162_vm6, %v647_v5, %v710_v54  ;;  %v714_v18 = vsel %vm4036_vm3, %v648_v6, %v713_v63  ;;  %v631_v19 = vor.u32 %v629_v59, %v628_v7  ;;  %v632_v22 = vrot.slane %v628_v7, 4  ;;  %v4219_v26 = vld [vmem:[#allocation2 + $0x14] sm:$0x1]  ;;  %v4236_v36 = vld [vmem:[#allocation2] sm:$0xe] }
 0x10a   : > { %712 = vst [vmem:[#allocation2 + $0x40] sm:$0xf] %v711_v17  ;;  %715 = vst [vmem:[#allocation2 + $0x44] sm:$0x1] %v714_v18  ;;  %v3114_v27 = vcombine.low %v718_v23, %v4193_v47  ;;  %v772_v30 = vor.u32 %v771_v16, %v768_v15  ;;  %v1175_v31 = vrot.slane %v4155_v25, 5  ;;  %v4234_v35 = vrot.slane %v808_v12, 4 }
 0x10b   : > { %v699_v32 = vsel %vm4162_vm6, %v631_v19, %v698_v0  ;;  %v702_v34 = vsel %vm4036_vm3, %v632_v22, %v701_v9  ;;  %v777_v10 = vrot.slane %v775_v11, 5  ;;  %v723_v38 = vld [vmem:[#allocation2 + $0x38] sm:$0xf]  ;;  %v780_v45 = vshrl.u32 %v718_v23, 16  ;;  %v3853_v2 = vld [vmem:[%s4725_s3 + $0xe0] sm:$0xff]   ;;  %v3859_v25 = vld [vmem:[%s4725_s3 + $0xc8] sm:$0xff]  }
 0x10c   : > { %700 = vst [vmem:[#allocation2 + $0x30] sm:$0xf] %v699_v32  ;;  %703 = vst [vmem:[#allocation2 + $0x34] sm:$0x1] %v702_v34  ;;  %3584 = vmatmul.mubr.bf16.vlgmr.msra.gmra.mxu0 %v3114_v27  ;;  %v773_v37 = vrot.slane %v772_v30, 4  ;;  %v783_v40 = vshll.u32 %v718_v23, 16 }
 0x10d   : > { %v789_v41 = vshll.u32 %v4219_v26, 16  ;;  %3616 = vmatpush3.bf16.msra.mxu0 %v4120_v1  ;;  %v813_v39 = vrot.slane %v811_v13, 5  ;;  %v850_v42 = vshrl.u32 %v723_v38, 16  ;;  %v796_v43 = vrot.slane %v794_v51, 4  ;;  %v4261_v6 = vld [vmem:[#allocation2 + $0x3c] sm:$0x1] }
 0x10e   : > { %v799_v44 = vrot.slane %v797_v52, 5  ;;  %3617 = vmatprep.subr.bf16.mxu0 %v3846_v28  ;;  %v721_v46 = vld [vmem:[#allocation2 + $0x28] sm:$0xf]  ;;  %v778_v48 = vsel %vm4215_vm9, %v773_v37, %v777_v10  ;;  %v853_v1 = vshll.u32 %v723_v38, 16  ;;  %v782_v50 = vrot.slane %v780_v45, 4  ;;  %v3855_v37 = vld [vmem:[%s4725_s3 + $0xd8] sm:$0xff]  }
 0x10f   : > { %v785_v20 = vrot.slane %v783_v40, 5  ;;  %v822_v21 = vshrl.u32 %v721_v46, 16  ;;  %v825_v33 = vshll.u32 %v721_v46, 16  ;;  %v3115_v53 = vcombine.low %v720_v8, %v721_v46  ;;  %v4251_v52 = vld [vmem:[#allocation2 + $0x24] sm:$0x1] }
 0x110   : > { %v3101_v54 = vcombine.low %v764_v29, %v778_v48  ;;  %v791_v55 = vrot.slane %v789_v41, 5  ;;  %v800_v47 = vor.u32 %v799_v44, %v796_v43  ;;  %v3125_v57 = vrot.slane %v4236_v36, 9  ;;  %v4258_v3 = vld [vmem:[#allocation2 + $0x2c] sm:$0x1]  ;;  %v1147_v13 = vld [vmem:[#allocation2 + $0x8] sm:$0xe] }
 0x111   : > { %v786_v51 = vor.u32 %v785_v20, %v782_v50  ;;  %v824_v58 = vrot.slane %v822_v21, 4  ;;  %v827_v59 = vrot.slane %v825_v33, 5  ;;  %3587 = vmatprep.mubr.bf16.mxu0 %v3115_v53  ;;  %3618 = vmatpush3.bf16.msra.mxu0 %v3846_v28  ;;  %v852_v60 = vrot.slane %v850_v42, 4  ;;  %v3852_v23 = vld [vmem:[#allocation2 + $0x8] ss:$8 sps:$4 sm:$0xff]   ;;  %v3861_v36 = vld [vmem:[%s4725_s3 + $0xc0] sm:$0xff]  }
 0x112   : > { %v803_v61 = vshll.u32 %v4240_v14, 16  ;;  %3559 = vmatprep.mubr.bf16.mxu1 %v3101_v54  ;;  %3619 = vmatprep.subr.bf16.mxu0 %v3849_v49  ;;  %v855_v62 = vrot.slane %v853_v1, 5  ;;  %v801_v0 = vrot.slane %v800_v47, 4  ;;  %v814_v5 = vor.u32 %v813_v39, %v4234_v35  ;;  %v3854_v35 = vld [vmem:[%s4725_s3 + $0xb0] sm:$0xff]   ;;  %v3856_v1 = vld [vmem:[%s4725_s3 + $0xa8] sm:$0xff]  }
 0x113   : > { %v787_v63 = vrot.slane %v786_v51, 4  ;;  %v722_v7 = vld [vmem:[#allocation2 + $0x30] sm:$0xf]  ;;  %v817_v11 = vshll.u32 %v4251_v52, 16  ;;  %v828_v9 = vor.u32 %v827_v59, %v824_v58  ;;  %v831_v12 = vshll.u32 %v4258_v3, 16  ;;  %v3864_v58 = vld [vmem:[%s4725_s3 + $0x178] sm:$0xff]  }
 0x114   : > { %v805_v8 = vrot.slane %v803_v61, 5  ;;  %v836_v15 = vshrl.u32 %v722_v7, 16  ;;  %v839_v16 = vshll.u32 %v722_v7, 16  ;;  %v3116_v17 = vcombine.low %v722_v7, %v723_v38  ;;  %v4267_v19 = vld [vmem:[#allocation2 + $0x34] sm:$0x1]  ;;  %v3915_v21 = vld [vmem:[%s4729_s7 + $0x28] sm:$0xff]  }
 0x115   : > { %v792_v18 = vsel %vm4215_vm9, %v787_v63, %v791_v55  ;;  %3620 = vmatpush3.bf16.msra.mxu0 %v3849_v49  ;;  %v815_v27 = vrot.slane %v814_v5, 4  ;;  %v819_v28 = vrot.slane %v817_v11, 5  ;;  %v829_v29 = vrot.slane %v828_v9, 4  ;;  %v3857_v20 = vld [vmem:[%s4725_s3 + $0xd0] sm:$0xff]   ;;  %v3858_v55 = vld [vmem:[%s4725_s3 + $0xa0] sm:$0xff]  }
 0x116   : > { %v806_v22 = vsel %vm4215_vm9, %v801_v0, %v805_v8  ;;  %v838_v30 = vrot.slane %v836_v15, 4  ;;  %v841_v32 = vrot.slane %v839_v16, 5  ;;  %3588 = vmatmul.mubr.bf16.gmra.mxu0 %v3116_v17  ;;  %3621 = vmatprep.subr.bf16.mxu0 %v3853_v2  ;;  %v833_v10 = vrot.slane %v831_v12, 5  ;;  %v3863_v59 = vld [vmem:[#allocation2 + $0x18] ss:$8 sps:$4 sm:$0xff]   ;;  %v3867_v63 = vld [vmem:[%s4725_s3 + $0x170] sm:$0xff]  }
 0x117   : > { %v3102_v34 = vcombine.low %v792_v18, %v806_v22  ;;  %v1179_v38 = vrot.slane %v4201_v56, 5  ;;  %3631 = vmatprep.mubr.bf16.mxu0 %v3852_v23  ;;  %v845_v45 = vshll.u32 %v4267_v19, 16  ;;  %v856_v40 = vor.u32 %v855_v62, %v852_v60  ;;  %v3865_v60 = vld [vmem:[%s4725_s3 + $0x88] sm:$0xff]   ;;  %v1531_v61 = vld [vmem:[#allocation2 + $0x10] sm:$0xf]  ;;  %v3868_v23 = vld [vmem:[%s4725_s3 + $0x80] sm:$0xff]  }
 0x118   : > { %v859_v41 = vshll.u32 %v4261_v6, 16  ;;  %v820_v39 = vsel %vm4215_vm9, %v815_v27, %v819_v28  ;;  %v834_v42 = vsel %vm4215_vm9, %v829_v29, %v833_v10  ;;  %v842_v43 = vor.u32 %v841_v32, %v838_v30  ;;  %v3866_v62 = vld [vmem:[#allocation2 + $0x28] ss:$8 sps:$4 sm:$0xff]   ;;  %v4333_v5 = vld [vmem:[#allocation2 + $0x14] sm:$0x1] }
 0x119   : > { %3560 = vmatmul.mubr.bf16.vlgmr.msra.gmra.mxu1 %v3102_v34  ;;  %v3126_v44 = vrot.slane %v1147_v13, 9  ;;  %3622 = vmatpush3.bf16.msra.mxu0 %v3853_v2  ;;  %v3103_v46 = vcombine.low %v820_v39, %v834_v42  ;;  %v847_v56 = vrot.slane %v845_v45, 5  ;;  %v857_v48 = vrot.slane %v856_v40, 4  ;;  %v1148_v0 = vld [vmem:[#allocation2 + $0x10] sm:$0xe]  ;;  %v3871_v45 = vld [vmem:[%s4725_s3 + $0x138] sm:$0xff]  }
 0x11a   : > { %3592 = vmatpush3.bf16.msra.mxu1 %v4132_v4  ;;  %v861_v49 = vrot.slane %v859_v41, 5  ;;  %3623 = vmatprep.subr.bf16.mxu0 %v3855_v37  ;;  %v843_v50 = vrot.slane %v842_v43, 4  ;;  %v1176_v53 = vsel %vm4295_vm12, %v3125_v57, %v1175_v31  ;;  %v3860_v31 = vld [vmem:[%s4725_s3 + $0x98] sm:$0xff]   ;;  %v3862_v57 = vld [vmem:[%s4725_s3 + $0x90] sm:$0xff]   ;;  %v1529_v8 = vld [vmem:[#allocation2 + $0x8] sm:$0xf] }
 0x11b   : > { %3593 = vmatprep.subr.bf16.mxu1 %v3854_v35  ;;  %3563 = vmatprep.mubr.bf16.mxu1 %v3103_v46  ;;  %v1180_v54 = vsel %vm4295_vm12, %v3126_v44, %v1179_v38  ;;  %v1149_v2 = vld [vmem:[#allocation2 + $0x18] sm:$0xe]  ;;  %v1812_v7 = vld [vmem:[#allocation2 + $0x10] sm:$0xe]  ;;  %v4335_v11 = vld [vmem:[#allocation2 + $0xc] sm:$0x1] }
 0x11c   : > { %v862_v4 = vsel %vm4215_vm9, %v857_v48, %v861_v49  ;;  %v848_v33 = vsel %vm4215_vm9, %v843_v50, %v847_v56  ;;  %v3149_v47 = vcombine.low %v1176_v53, %v1180_v54  ;;  %v1811_v9 = vld [vmem:[#allocation2 + $0x8] sm:$0xe]  ;;  %v1560_v12 = vshrl.u32 %v1531_v61, 16  ;;  %v1152_v41 = vld [vmem:[#allocation2 + $0x30] sm:$0xe] }
 0x11d   : > { %3624 = vmatpush3.bf16.msra.mxu0 %v3855_v37  ;;  %v3104_v51 = vcombine.low %v848_v33, %v862_v4  ;;  %v1563_v13 = vshll.u32 %v1531_v61, 16  ;;  %v3218_v15 = vrot.slane %v1812_v7, 9  ;;  %v1841_v16 = vrot.slane %v4333_v5, 5  ;;  %v1151_v17 = vld [vmem:[#allocation2 + $0x28] sm:$0xe] }
 0x11e   : > { %3594 = vmatpush3.bf16.msra.mxu1 %v3854_v35  ;;  %3625 = vmatprep.subr.bf16.mxu0 %v3857_v20  ;;  %v1183_v18 = vrot.slane %v4219_v26, 5  ;;  %v1187_v22 = vrot.slane %v4240_v14, 5  ;;  %v1546_v27 = vshrl.u32 %v1529_v8, 16  ;;  %v1549_v28 = vshll.u32 %v1529_v8, 16  ;;  %v1150_v35 = vld [vmem:[#allocation2 + $0x20] sm:$0xe] }
 0x11f   : > { %3595 = vmatprep.subr.bf16.mxu1 %v3856_v1  ;;  %v3127_v29 = vrot.slane %v1148_v0, 9  ;;  %v3128_v30 = vrot.slane %v1149_v2, 9  ;;  %v3217_v32 = vrot.slane %v1811_v9, 9  ;;  %v1837_v34 = vrot.slane %v4335_v11, 5  ;;  %v3870_v26 = vld [vmem:[%s4725_s3 + $0x168] sm:$0xff]  }
 0x120   : > { %v3130_v14 = vrot.slane %v1151_v17, 9  ;;  %v1195_v10 = vrot.slane %v4258_v3, 5  ;;  %v1562_v37 = vrot.slane %v1560_v12, 4  ;;  %v1565_v38 = vrot.slane %v1563_v13, 5  ;;  %v1153_v43 = vld [vmem:[#allocation2 + $0x38] sm:$0xe] }
 0x121   : > { %3564 = vmatmul.mubr.bf16.gmra.mxu1 %v3104_v51  ;;  %3626 = vmatpush3.bf16.msra.mxu0 %v3857_v20  ;;  %v1842_v40 = vsel %vm4295_vm12, %v3218_v15, %v1841_v16  ;;  %v3129_v39 = vrot.slane %v1150_v35, 9  ;;  %v1191_v42 = vrot.slane %v4251_v52, 5  ;;  %v1548_v44 = vrot.slane %v1546_v27, 4  ;;  %v3869_v3 = vld [vmem:[#allocation2 + $0x38] ss:$8 sps:$4 sm:$0xff]   ;;  %v3876_v17 = vld [vmem:[%s4725_s3 + $0x150] sm:$0xff]  }
 0x122   : > { %3596 = vmatpush3.bf16.msra.mxu1 %v3856_v1  ;;  %3607 = vmatprep.mubr.bf16.mxu1 %v3149_v47  ;;  %v1551_v46 = vrot.slane %v1549_v28, 5  ;;  %v1184_v56 = vsel %vm4295_vm12, %v3127_v29, %v1183_v18  ;;  %v1838_v48 = vsel %vm4295_vm12, %v3217_v32, %v1837_v34  ;;  %v1188_v49 = vsel %vm4295_vm12, %v3128_v30, %v1187_v22  ;;  %v3872_v52 = vld [vmem:[%s4725_s3 + $0x160] sm:$0xff]   ;;  %v3873_v47 = vld [vmem:[%s4725_s3 + $0x130] sm:$0xff]   ;;  %v4382_v61 = vld [vmem:[#allocation2 + $0x1c] sm:$0x1] }
 0x123   : > { %3597 = vmatprep.subr.bf16.mxu1 %v3858_v55  ;;  %3627 = vmatprep.subr.bf16.mxu0 %v3859_v25  ;;  %v3241_v1 = vcombine.low %v1838_v48, %v1842_v40  ;;  %v1196_v50 = vsel %vm4295_vm12, %v3130_v14, %v1195_v10  ;;  %v1566_v20 = vor.u32 %v1565_v38, %v1562_v37  ;;  %v3131_v4 = vrot.slane %v1152_v41, 9  ;;  %v4388_v2 = vld [vmem:[#allocation2 + $0x2c] sm:$0x1]  ;;  %v4391_v12 = vld [vmem:[#allocation2 + $0x34] sm:$0x1]  ;;  %v3877_v30 = vld [vmem:[%s4725_s3 + $0x120] sm:$0xff]  }
 0x124   : > { %v1199_v33 = vrot.slane %v4267_v19, 5  ;;  %v3132_v53 = vrot.slane %v1153_v43, 9  ;;  %v1203_v54 = vrot.slane %v4261_v6, 5  ;;  %v3150_v51 = vcombine.low %v1184_v56, %v1188_v49  ;;  %v4376_v6 = vld [vmem:[#allocation2 + $0x24] sm:$0x1]  ;;  %v3878_v14 = vld [vmem:[%s4725_s3 + $0x148] sm:$0xff]  }
 0x125   : > { %3628 = vmatpush3.bf16.msra.mxu0 %v3859_v25  ;;  %v3874_v25 = vld [vmem:[%s4725_s3 + $0x158] sm:$0xff]   ;;  %v1569_v19 = vshll.u32 %v4333_v5, 16  ;;  %v1815_v5 = vld [vmem:[#allocation2 + $0x28] sm:$0xe]  ;;  %v1816_v13 = vld [vmem:[#allocation2 + $0x30] sm:$0xe] }
 0x126   : > { %3598 = vmatpush3.bf16.msra.mxu1 %v3858_v55  ;;  %3629 = vmatprep.subr.bf16.mxu0 %v3861_v36  ;;  %v1192_v55 = vsel %vm4295_vm12, %v3129_v39, %v1191_v42  ;;  %v1204_v0 = vsel %vm4295_vm12, %v3132_v53, %v1203_v54  ;;  %v1845_v22 = vrot.slane %v4382_v61, 5  ;;  %v3221_v27 = vrot.slane %v1815_v5, 9  ;;  %v4413_v10 = vld [vmem:[#allocation2 + $0x38] sm:$0xe]  ;;  %v2192_v37 = vld [vmem:[#allocation2 + $0x10] sm:$0xf] }
 0x127   : > { %3599 = vmatprep.subr.bf16.mxu1 %v3860_v31  ;;  %v1571_v8 = vrot.slane %v1569_v19, 5  ;;  %v1853_v28 = vrot.slane %v4388_v2, 5  ;;  %v3222_v34 = vrot.slane %v1816_v13, 9  ;;  %v1857_v35 = vrot.slane %v4391_v12, 5  ;;  %v1535_v40 = vld [vmem:[#allocation2 + $0x20] sm:$0xf] }
 0x128   : > { %v2194_v41 = vld [vmem:[#allocation2 + $0x18] sm:$0xf]  ;;  %v4427_v43 = vld [vmem:[#allocation2 + $0x40] sm:$0xe]  ;;  %v3223_v48 = vrot.slane %v4413_v10, 9  ;;  %v1583_v10 = vshll.u32 %v4382_v61, 16 }
 0x129   : > { %3630 = vmatpush3.bf16.msra.mxu0 %v3861_v36  ;;  %v3151_v36 = vcombine.low %v1192_v55, %v1196_v50  ;;  %v4425_v42 = vsel %vm4295_vm12, %v3221_v27, %v1853_v28  ;;  %v4434_v56 = vsel %vm4295_vm12, %v3222_v34, %v1857_v35  ;;  %v1533_v49 = vld [vmem:[#allocation2 + $0x18] sm:$0xf]  ;;  %v2212_v50 = vshll.u32 %v2192_v37, 16  ;;  %v3880_v54 = vld [vmem:[%s4725_s3 + $0x140] sm:$0xff]  }
 0x12a   : > { %3600 = vmatpush3.bf16.msra.mxu1 %v3860_v31  ;;  %3663 = vmatprep.subr.bf16.mxu0 %v3864_v58  ;;  %v1552_v31 = vor.u32 %v1551_v46, %v1548_v44  ;;  %v1537_v44 = vld [vmem:[#allocation2 + $0x28] sm:$0xf]  ;;  %v1539_v46 = vld [vmem:[#allocation2 + $0x30] sm:$0xf]  ;;  %v2226_v53 = vshll.u32 %v2194_v41, 16  ;;  %v1597_v61 = vshll.u32 %v4376_v6, 16 }
 0x12b   : > { %3601 = vmatprep.subr.bf16.mxu1 %v3862_v57  ;;  %v1605_v55 = vshll.u32 %v1537_v44, 16  ;;  %v1541_v5 = vld [vmem:[#allocation2 + $0x38] sm:$0xf]  ;;  %v1543_v13 = vld [vmem:[#allocation2 + $0x40] sm:$0xf] }
 0x12c   : > { %3632 = vmatmul.mubr.bf16.vlgmr.msra.gmra.mxu0 %v3863_v59  ;;  %v1555_v59 = vshll.u32 %v4335_v11, 16  ;;  %v1553_v7 = vrot.slane %v1552_v31, 4  ;;  %v1849_v11 = vrot.slane %v4376_v6, 5  ;;  %v3881_v31 = vld [vmem:[%s4725_s3 + $0x110] sm:$0xff]   ;;  %v1630_v28 = vshrl.u32 %v1541_v5, 16 }
 0x12d   : > { %3635 = vmatprep.mubr.bf16.mxu0 %v3866_v62  ;;  %3664 = vmatpush3.bf16.msra.mxu0 %v3864_v58  ;;  %v3875_v58 = vld [vmem:[%s4725_s3 + $0x128] sm:$0xff]   ;;  %v1813_v62 = vld [vmem:[#allocation2 + $0x18] sm:$0xe] }
 0x12e   : > { %3602 = vmatpush3.bf16.msra.mxu1 %v3862_v57  ;;  %3665 = vmatprep.subr.bf16.mxu0 %v3867_v63  ;;  %v1814_v57 = vld [vmem:[#allocation2 + $0x20] sm:$0xe]  ;;  %v1557_v15 = vrot.slane %v1555_v59, 5  ;;  %v3219_v18 = vrot.slane %v1813_v62, 9  ;;  %v3882_v59 = vld [vmem:[%s4725_s3 + $0x1f8] sm:$0xff]  }
 0x12f   : > { %3603 = vmatprep.subr.bf16.mxu1 %v3865_v60  ;;  %v3220_v9 = vrot.slane %v1814_v57, 9  ;;  %v1574_v57 = vshrl.u32 %v1533_v49, 16 }
 0x130   : > { %v1558_v29 = vsel %vm4215_vm9, %v1553_v7, %v1557_v15  ;;  %v4417_v38 = vsel %vm4295_vm12, %v3219_v18, %v1845_v22  ;;  %v4453_v15 = vld [vmem:[#allocation2 + $0x14] sm:$0x1] }
 0x131   : > { %3666 = vmatpush3.bf16.msra.mxu0 %v3867_v63  ;;  %v1200_v63 = vsel %vm4295_vm12, %v3131_v4, %v1199_v33  ;;  %v4407_v32 = vsel %vm4295_vm12, %v3220_v9, %v1849_v11  ;;  %v1591_v4 = vshll.u32 %v1535_v40, 16  ;;  %v2223_v33 = vshrl.u32 %v2194_v41, 16 }
 0x132   : > { %3604 = vmatpush3.bf16.msra.mxu1 %v3865_v60  ;;  %3667 = vmatprep.subr.bf16.mxu0 %v3870_v26  ;;  %v1567_v60 = vrot.slane %v1566_v20, 4  ;;  %v3242_v39 = vcombine.low %v4417_v38, %v4407_v32  ;;  %v1588_v20 = vshrl.u32 %v1535_v40, 16  ;;  %v2228_v11 = vrot.slane %v2226_v53, 5  ;;  %v4463_v40 = vld [vmem:[#allocation2 + $0x1c] sm:$0x1]  ;;  %v3886_v32 = vld [vmem:[%s4725_s3 + $0x1e8] sm:$0xff]  }
 0x133   : > { %3605 = vmatprep.subr.bf16.mxu1 %v3868_v23  ;;  %v2225_v9 = vrot.slane %v2223_v33, 4  ;;  %v2218_v41 = vshll.u32 %v4453_v15, 16 }
 0x134   : > { %3636 = vmatmul.mubr.bf16.gmra.mxu0 %v3869_v3  ;;  %v1572_v16 = vsel %vm4215_vm9, %v1567_v60, %v1571_v8  ;;  %v3879_v3 = vld [vmem:[%s4725_s3 + $0x118] sm:$0xff]   ;;  %v3243_v60 = vcombine.low %v4425_v42, %v4434_v56  ;;  %v1590_v7 = vrot.slane %v1588_v20, 4  ;;  %v1593_v8 = vrot.slane %v1591_v4, 5 }
 0x135   : > { %3679 = vmatprep.mubr.bf16.mxu0 %v3241_v1  ;;  %3668 = vmatpush3.bf16.msra.mxu0 %v3870_v26  ;;  %v3205_v26 = vcombine.low %v1558_v29, %v1572_v16  ;;  %v2209_v1 = vshrl.u32 %v2192_v37, 16  ;;  %v1633_v29 = vshll.u32 %v1541_v5, 16  ;;  %v1611_v42 = vshll.u32 %v4388_v2, 16  ;;  %v3885_v2 = vld [vmem:[%s4725_s3 + $0x100] sm:$0xff]  }
 0x136   : > { %3606 = vmatpush3.bf16.msra.mxu1 %v3868_v23  ;;  %3669 = vmatprep.subr.bf16.mxu0 %v3872_v52  ;;  %v3152_v23 = vcombine.low %v1200_v63, %v1204_v0  ;;  %v2214_v0 = vrot.slane %v2212_v50, 5  ;;  %v1594_v37 = vor.u32 %v1593_v8, %v1590_v7  ;;  %v1625_v56 = vshll.u32 %v4391_v12, 16 }
 0x137   : > { %3639 = vmatprep.subr.bf16.mxu1 %v3871_v45  ;;  %v2211_v63 = vrot.slane %v2209_v1, 4  ;;  %v1635_v1 = vrot.slane %v1633_v29, 5  ;;  %v2232_v20 = vshll.u32 %v4463_v40, 16  ;;  %v2220_v53 = vrot.slane %v2218_v41, 5  ;;  %v2202_v29 = vld [vmem:[#allocation2 + $0x38] sm:$0xf] }
 0x138   : > { %v1595_v33 = vrot.slane %v1594_v37, 4  ;;  %v3891_v41 = vld [vmem:[%s4725_s3 + $0x1a8] sm:$0xff]  }
 0x139   : > { %3608 = vmatmul.mubr.bf16.vlgmr.msra.gmra.mxu1 %v3150_v51  ;;  %3670 = vmatpush3.bf16.msra.mxu0 %v3872_v52  ;;  %v4437_v52 = vld [vmem:[#allocation2 + $0x44] sm:$0x1]  ;;  %v1602_v51 = vshrl.u32 %v1537_v44, 16  ;;  %v2215_v35 = vor.u32 %v2214_v0, %v2211_v63  ;;  %v2229_v44 = vor.u32 %v2228_v11, %v2225_v9  ;;  %v3889_v11 = vld [vmem:[%s4725_s3 + $0x1b0] sm:$0xff]  }
 0x13a   : > { %3611 = vmatprep.mubr.bf16.mxu1 %v3151_v36  ;;  %3640 = vmatpush3.bf16.msra.mxu1 %v3871_v45  ;;  %v4419_v45 = vld [vmem:[#allocation2 + $0x3c] sm:$0x1]  ;;  %v3224_v36 = vrot.slane %v4427_v43, 9  ;;  %v1865_v62 = vrot.slane %v4437_v52, 5  ;;  %v3884_v43 = vld [vmem:[%s4725_s3 + $0x1f0] sm:$0xff]  }
 0x13b   : > { %3641 = vmatprep.subr.bf16.mxu1 %v3873_v47  ;;  %3671 = vmatprep.subr.bf16.mxu0 %v3874_v25  ;;  %v1861_v19 = vrot.slane %v4419_v45, 5  ;;  %v1604_v16 = vrot.slane %v1602_v51, 4  ;;  %v2216_v50 = vrot.slane %v2215_v35, 4  ;;  %v2230_v38 = vrot.slane %v2229_v44, 4 }
 0x13c   : > { %v1866_v6 = vsel %vm4295_vm12, %v3224_v36, %v1865_v62  ;;  %v3887_v36 = vld [vmem:[%s4725_s3 + $0x1b8] sm:$0xff]   ;;  %v1585_v62 = vrot.slane %v1583_v10, 5  ;;  %v2282_v44 = vshll.u32 %v2202_v29, 16 }
 0x13d   : > { %3672 = vmatpush3.bf16.msra.mxu0 %v3874_v25  ;;  %v1619_v25 = vshll.u32 %v1539_v46, 16  ;;  %v4460_v34 = vsel %vm4295_vm12, %v3223_v48, %v1861_v19  ;;  %v1639_v19 = vshll.u32 %v4419_v45, 16 }
 0x13e   : > { %3642 = vmatpush3.bf16.msra.mxu1 %v3873_v47  ;;  %3673 = vmatprep.subr.bf16.mxu0 %v3876_v17  ;;  %v1616_v47 = vshrl.u32 %v1539_v46, 16  ;;  %v3244_v0 = vcombine.low %v4460_v34, %v1866_v6  ;;  %v2196_v34 = vld [vmem:[#allocation2 + $0x20] sm:$0xf]  ;;  %v2284_v6 = vrot.slane %v2282_v44, 5 }
 0x13f   : > { %3643 = vmatprep.subr.bf16.mxu1 %v3875_v58  ;;  %v1621_v22 = vrot.slane %v1619_v25, 5  ;;  %v1599_v25 = vrot.slane %v1597_v61, 5 }
 0x140   : > { %v1618_v18 = vrot.slane %v1616_v47, 4 }
 0x141   : > { %3612 = vmatmul.mubr.bf16.gmra.mxu1 %v3152_v23  ;;  %3674 = vmatpush3.bf16.msra.mxu0 %v3876_v17  ;;  %v1607_v17 = vrot.slane %v1605_v55, 5  ;;  %v1576_v23 = vrot.slane %v1574_v57, 4  ;;  %v1627_v55 = vrot.slane %v1625_v56, 5  ;;  %v2221_v57 = vsel %vm4215_vm9, %v2216_v50, %v2220_v53  ;;  %v3892_v53 = vld [vmem:[#allocation2 + $0x10] ss:$8 sps:$4 sm:$0xff]  }
 0x142   : > { %3644 = vmatpush3.bf16.msra.mxu1 %v3875_v58  ;;  %3655 = vmatprep.mubr.bf16.mxu1 %v3205_v26  ;;  %v1577_v58 = vshll.u32 %v1533_v49, 16  ;;  %v1644_v26 = vshrl.u32 %v1543_v13, 16  ;;  %v1632_v49 = vrot.slane %v1630_v28, 4  ;;  %v1600_v63 = vsel %vm4215_vm9, %v1595_v33, %v1599_v25  ;;  %v2204_v33 = vld [vmem:[#allocation2 + $0x40] sm:$0xf] }
 0x143   : > { %3645 = vmatprep.subr.bf16.mxu1 %v3877_v30  ;;  %3675 = vmatprep.subr.bf16.mxu0 %v3878_v14  ;;  %v1608_v46 = vor.u32 %v1607_v17, %v1604_v16  ;;  %v1641_v16 = vrot.slane %v1639_v19, 5  ;;  %v2240_v56 = vshll.u32 %v2196_v34, 16  ;;  %v4534_v19 = vld [vmem:[#allocation2 + $0x3c] sm:$0x1] }
 0x144   : > { %v1579_v27 = vrot.slane %v1577_v58, 5  ;;  %v1646_v4 = vrot.slane %v1644_v26, 4  ;;  %v2234_v58 = vrot.slane %v2232_v20, 5 }
 0x145   : > { %3676 = vmatpush3.bf16.msra.mxu0 %v3878_v14  ;;  %v1647_v14 = vshll.u32 %v1543_v13, 16 }
 0x146   : > { %3646 = vmatpush3.bf16.msra.mxu1 %v3877_v30  ;;  %3677 = vmatprep.subr.bf16.mxu0 %v3880_v54  ;;  %v3883_v30 = vld [vmem:[%s4725_s3 + $0x108] sm:$0xff]   ;;  %v1580_v48 = vor.u32 %v1579_v27, %v1576_v23  ;;  %v2235_v45 = vsel %vm4215_vm9, %v2230_v38, %v2234_v58  ;;  %v2200_v27 = vld [vmem:[#allocation2 + $0x30] sm:$0xf]  ;;  %v2242_v38 = vrot.slane %v2240_v56, 5  ;;  %v3896_v58 = vld [vmem:[%s4725_s3 + $0x198] sm:$0xff]  }
 0x147   : > { %3647 = vmatprep.subr.bf16.mxu1 %v3879_v3  ;;  %v1649_v12 = vrot.slane %v1647_v14, 5  ;;  %v3297_v9 = vcombine.low %v2221_v57, %v2235_v45  ;;  %v2198_v23 = vld [vmem:[#allocation2 + $0x28] sm:$0xf]  ;;  %v2265_v10 = vshrl.u32 %v2200_v27, 16  ;;  %v2296_v57 = vshll.u32 %v2204_v33, 16  ;;  %v3897_v45 = vld [vmem:[%s4725_s3 + $0x1c0] sm:$0xff]  }
 0x148   : > { %v1581_v47 = vrot.slane %v1580_v48, 4  ;;  %v2251_v26 = vshrl.u32 %v2198_v23, 16  ;;  %v2254_v14 = vshll.u32 %v2198_v23, 16  ;;  %v3893_v48 = vld [vmem:[%s4725_s3 + $0x1d0] sm:$0xff]  }
 0x149   : > { %3678 = vmatpush3.bf16.msra.mxu0 %v3880_v54  ;;  %v1613_v54 = vrot.slane %v1611_v42, 5  ;;  %v2268_v42 = vshll.u32 %v2200_v27, 16  ;;  %v2267_v20 = vrot.slane %v2265_v10, 4 }
 0x14a   : > { %3648 = vmatpush3.bf16.msra.mxu1 %v3879_v3  ;;  %3711 = vmatprep.subr.bf16.mxu0 %v3882_v59  ;;  %v1622_v3 = vor.u32 %v1621_v22, %v1618_v18  ;;  %v1586_v8 = vsel %vm4215_vm9, %v1581_v47, %v1585_v62  ;;  %v4531_v47 = vld [vmem:[#allocation2 + $0x34] sm:$0x1] }
 0x14b   : > { %3649 = vmatprep.subr.bf16.mxu1 %v3881_v31  ;;  %v3206_v17 = vcombine.low %v1586_v8, %v1600_v63  ;;  %v2288_v63 = vshll.u32 %v4534_v19, 16 }
 0x14c   : > { %3680 = vmatmul.mubr.bf16.vlgmr.msra.gmra.mxu0 %v3242_v39  ;;  %v1609_v39 = vrot.slane %v1608_v46, 4  ;;  %v1623_v51 = vrot.slane %v1622_v3, 4  ;;  %v2206_v46 = vld [vmem:[#allocation2 + $0x48] sm:$0xf]  ;;  %v2237_v3 = vshrl.u32 %v2196_v34, 16 }
 0x14d   : > { %3683 = vmatprep.mubr.bf16.mxu0 %v3243_v60  ;;  %3712 = vmatpush3.bf16.msra.mxu0 %v3882_v59  ;;  %v1650_v59 = vor.u32 %v1649_v12, %v1646_v4  ;;  %v1653_v60 = vshll.u32 %v4437_v52, 16  ;;  %v3888_v52 = vld [vmem:[%s4725_s3 + $0x1e0] sm:$0xff]   ;;  %v2307_v50 = vshrl.u32 %v2206_v46, 16  ;;  %v2270_v4 = vrot.slane %v2268_v42, 5 }
 0x14e   : > { %3650 = vmatpush3.bf16.msra.mxu1 %v3881_v31  ;;  %3713 = vmatprep.subr.bf16.mxu0 %v3884_v43  ;;  %v1636_v31 = vor.u32 %v1635_v1, %v1632_v49  ;;  %v1614_v5 = vsel %vm4215_vm9, %v1609_v39, %v1613_v54  ;;  %v1628_v7 = vsel %vm4215_vm9, %v1623_v51, %v1627_v55  ;;  %v3894_v49 = vld [vmem:[%s4725_s3 + $0x1a0] sm:$0xff]   ;;  %v2253_v1 = vrot.slane %v2251_v26, 4  ;;  %v3895_v54 = vld [vmem:[%s4725_s3 + $0x1c8] sm:$0xff]  }
 0x14f   : > { %3651 = vmatprep.subr.bf16.mxu1 %v3883_v30  ;;  %v1651_v18 = vrot.slane %v1650_v59, 4  ;;  %v1655_v22 = vrot.slane %v1653_v60, 5  ;;  %v3207_v28 = vcombine.low %v1614_v5, %v1628_v7  ;;  %v2310_v39 = vshll.u32 %v2206_v46, 16  ;;  %v4527_v51 = vld [vmem:[#allocation2 + $0x24] sm:$0x1] }
 0x150   : > { %v1637_v13 = vrot.slane %v1636_v31, 4  ;;  %v4529_v55 = vld [vmem:[#allocation2 + $0x2c] sm:$0x1]  ;;  %v2271_v59 = vor.u32 %v2270_v4, %v2267_v20  ;;  %v2274_v60 = vshll.u32 %v4531_v47, 16  ;;  %v2246_v5 = vshll.u32 %v4527_v51, 16 }
 0x151   : > { %3714 = vmatpush3.bf16.msra.mxu0 %v3884_v43  ;;  %v1656_v37 = vsel %vm4215_vm9, %v1651_v18, %v1655_v22  ;;  %v2279_v43 = vshrl.u32 %v2202_v29, 16  ;;  %v2260_v31 = vshll.u32 %v4529_v55, 16  ;;  %v2309_v7 = vrot.slane %v2307_v50, 4  ;;  %v4550_v29 = vld [vmem:[#allocation2 + $0x44] sm:$0x1]  ;;  %v3902_v50 = vld [vmem:[%s4725_s3 + $0x238] sm:$0xff]  }
 0x152   : > { %3652 = vmatpush3.bf16.msra.mxu1 %v3883_v30  ;;  %3715 = vmatprep.subr.bf16.mxu0 %v3886_v32  ;;  %v3890_v30 = vld [vmem:[%s4725_s3 + $0x1d8] sm:$0xff]   ;;  %v1642_v35 = vsel %vm4215_vm9, %v1637_v13, %v1641_v16  ;;  %v2298_v13 = vrot.slane %v2296_v57, 5  ;;  %v3898_v16 = vld [vmem:[%s4725_s3 + $0x190] sm:$0xff]   ;;  %v2276_v18 = vrot.slane %v2274_v60, 5  ;;  %v2290_v23 = vrot.slane %v2288_v63, 5  ;;  %v3910_v60 = vld [vmem:[%s4725_s3 + $0x208] sm:$0xff]  }
 0x153   : > { %3653 = vmatprep.subr.bf16.mxu1 %v3885_v2  ;;  %v3208_v61 = vcombine.low %v1642_v35, %v1656_v37  ;;  %v2281_v12 = vrot.slane %v2279_v43, 4  ;;  %v2248_v35 = vrot.slane %v2246_v5, 5  ;;  %v2302_v10 = vshll.u32 %v4550_v29, 16  ;;  %v3899_v37 = vld [vmem:[%s4725_s3 + $0x188] sm:$0xff]   ;;  %v2474_v4 = vld [vmem:[#allocation2 + $0x10] sm:$0xe] }
 0x154   : > { %3684 = vmatmul.mubr.bf16.gmra.mxu0 %v3244_v0  ;;  %v3309_v24 = vrot.slane %v2474_v4, 9  ;;  %v2478_v63 = vld [vmem:[#allocation2 + $0x30] sm:$0xe]  ;;  %v2476_v5 = vld [vmem:[#allocation2 + $0x20] sm:$0xe] }
 0x155   : > { %3716 = vmatpush3.bf16.msra.mxu0 %v3886_v32  ;;  %3727 = vmatprep.mubr.bf16.mxu0 %v3297_v9  ;;  %v2239_v32 = vrot.slane %v2237_v3, 4  ;;  %v2285_v62 = vor.u32 %v2284_v6, %v2281_v12  ;;  %v2262_v9 = vrot.slane %v2260_v31, 5  ;;  %v3901_v12 = vld [vmem:[#allocation2 + $0x20] ss:$8 sps:$4 sm:$0xff]   ;;  %v3904_v6 = vld [vmem:[%s4725_s3 + $0x230] sm:$0xff]  }
 0x156   : > { %3654 = vmatpush3.bf16.msra.mxu1 %v3885_v2  ;;  %3717 = vmatprep.subr.bf16.mxu0 %v3888_v52  ;;  %v2256_v2 = vrot.slane %v2254_v14, 5 }
 0x157   : > { %3687 = vmatprep.subr.bf16.mxu1 %v3887_v36  ;;  %v2243_v0 = vor.u32 %v2242_v38, %v2239_v32  ;;  %v2286_v22 = vrot.slane %v2285_v62, 4  ;;  %v2500_v32 = vrot.slane %v4453_v15, 5  ;;  %v3906_v38 = vld [vmem:[%s4725_s3 + $0x228] sm:$0xff]   ;;  %v3907_v15 = vld [vmem:[%s4725_s3 + $0x220] sm:$0xff]  }
 0x158   : > { %v2257_v25 = vor.u32 %v2256_v2, %v2253_v1  ;;  %v2477_v62 = vld [vmem:[#allocation2 + $0x28] sm:$0xe] }
 0x159   : > { %3656 = vmatmul.mubr.bf16.vlgmr.msra.gmra.mxu1 %v3206_v17  ;;  %3718 = vmatpush3.bf16.msra.mxu0 %v3888_v52  ;;  %v2312_v52 = vrot.slane %v2310_v39, 5  ;;  %v2272_v17 = vrot.slane %v2271_v59, 4  ;;  %v2244_v27 = vrot.slane %v2243_v0, 4  ;;  %v2291_v42 = vsel %vm4215_vm9, %v2286_v22, %v2290_v23  ;;  %v3909_v59 = vld [vmem:[%s4725_s3 + $0x210] sm:$0xff]   ;;  %v2479_v0 = vld [vmem:[#allocation2 + $0x38] sm:$0xe] }
 0x15a   : > { %3659 = vmatprep.mubr.bf16.mxu1 %v3207_v28  ;;  %3688 = vmatpush3.bf16.msra.mxu1 %v3887_v36  ;;  %v2293_v36 = vshrl.u32 %v2204_v33, 16  ;;  %v2258_v8 = vrot.slane %v2257_v25, 4  ;;  %v4548_v28 = vld [vmem:[#allocation2 + $0x4c] sm:$0x1]  ;;  %v3903_v33 = vld [vmem:[#allocation2 + $0x30] ss:$8 sps:$4 sm:$0xff]   ;;  %v2501_v31 = vsel %vm4295_vm12, %v3309_v24, %v2500_v32 }
 0x15b   : > { %3689 = vmatprep.subr.bf16.mxu1 %v3889_v11  ;;  %3719 = vmatprep.subr.bf16.mxu0 %v3890_v30  ;;  %v2316_v34 = vshll.u32 %v4548_v28, 16  ;;  %v2249_v43 = vsel %vm4215_vm9, %v2244_v27, %v2248_v35  ;;  %v2504_v25 = vrot.slane %v4463_v40, 5  ;;  %v3908_v40 = vld [vmem:[%s4725_s3 + $0x218] sm:$0xff]   ;;  %v2481_v22 = vld [vmem:[#allocation2 + $0x48] sm:$0xe]  ;;  %v2524_v35 = vrot.slane %v4550_v29, 5 }
 0x15c   : > { %v2263_v26 = vsel %vm4215_vm9, %v2258_v8, %v2262_v9  ;;  %v3313_v8 = vrot.slane %v2478_v63, 9  ;;  %v2516_v9 = vrot.slane %v4531_v47, 5  ;;  %v2480_v27 = vld [vmem:[#allocation2 + $0x40] sm:$0xe]  ;;  %v3914_v29 = vld [vmem:[%s4727_s5 + $0x38] sm:$0xff]  }
 0x15d   : > { %3720 = vmatpush3.bf16.msra.mxu0 %v3890_v30  ;;  %v2313_v30 = vor.u32 %v2312_v52, %v2309_v7  ;;  %v3298_v44 = vcombine.low %v2249_v43, %v2263_v26  ;;  %v3312_v7 = vrot.slane %v2477_v62, 9  ;;  %v2512_v52 = vrot.slane %v4529_v55, 5  ;;  %v3917_v43 = vld [vmem:[%s4729_s7 + $0x20] sm:$0xff]   ;;  %v3931_v32 = vld [vmem:[%s4009_s16 + $0x18] sm:$0xff]  }
 0x15e   : > { %3690 = vmatpush3.bf16.msra.mxu1 %v3889_v11  ;;  %3721 = vmatprep.subr.bf16.mxu0 %v3893_v48  ;;  %v2295_v11 = vrot.slane %v2293_v36, 4  ;;  %v3905_v36 = vld [vmem:[#allocation2 + $0x40] ss:$8 sps:$4 sm:$0xff]   ;;  %v2517_v23 = vsel %vm4295_vm12, %v3313_v8, %v2516_v9  ;;  %v2528_v26 = vrot.slane %v4548_v28, 5  ;;  %v3913_v28 = vld [vmem:[%s4729_s7 + $0x30] sm:$0xff]  }
 0x15f   : > { %3691 = vmatprep.subr.bf16.mxu1 %v3891_v41  ;;  %v2314_v46 = vrot.slane %v2313_v30, 4  ;;  %v3316_v30 = vrot.slane %v2481_v22, 9 }
 0x160   : > { %v2299_v14 = vor.u32 %v2298_v13, %v2295_v11  ;;  %v3314_v11 = vrot.slane %v2479_v0, 9  ;;  %v2520_v13 = vrot.slane %v4534_v19, 5 }
 0x161   : > { %3660 = vmatmul.mubr.bf16.gmra.mxu1 %v3208_v61  ;;  %3722 = vmatpush3.bf16.msra.mxu0 %v3893_v48  ;;  %v2304_v48 = vrot.slane %v2302_v10, 5  ;;  %v2318_v61 = vrot.slane %v2316_v34, 5  ;;  %v2529_v10 = vsel %vm4295_vm12, %v3316_v30, %v2528_v26 }
 0x162   : > { %3692 = vmatpush3.bf16.msra.mxu1 %v3891_v41  ;;  %3703 = vmatprep.mubr.bf16.mxu1 %v3892_v53  ;;  %v2277_v41 = vsel %vm4215_vm9, %v2272_v17, %v2276_v18  ;;  %v2300_v56 = vrot.slane %v2299_v14, 4  ;;  %v2475_v53 = vld [vmem:[#allocation2 + $0x18] sm:$0xe]  ;;  %v2508_v17 = vrot.slane %v4527_v51, 5  ;;  %v2513_v18 = vsel %vm4295_vm12, %v3312_v7, %v2512_v52 }
 0x163   : > { %3693 = vmatprep.subr.bf16.mxu1 %v3894_v49  ;;  %3723 = vmatprep.subr.bf16.mxu0 %v3895_v54  ;;  %v3299_v3 = vcombine.low %v2277_v41, %v2291_v42  ;;  %v2319_v2 = vsel %vm4215_vm9, %v2314_v46, %v2318_v61  ;;  %v3310_v39 = vrot.slane %v2475_v53, 9  ;;  %v2521_v55 = vsel %vm4295_vm12, %v3314_v11, %v2520_v13  ;;  %v3912_v41 = vld [vmem:[%s4729_s7 + $0x38] sm:$0xff]   ;;  %v3916_v42 = vld [vmem:[%s4727_s5 + $0x30] sm:$0xff]   ;;  %v3923_v61 = vld [vmem:[%s4729_s7 + $0x8] sm:$0xff]  }
 0x164   : > { %v2305_v1 = vsel %vm4215_vm9, %v2300_v56, %v2304_v48  ;;  %v3335_v34 = vcombine.low %v2517_v23, %v2521_v55  ;;  %v3315_v51 = vrot.slane %v2480_v27, 9  ;;  %v3919_v46 = vld [vmem:[%s4729_s7 + $0x18] sm:$0xff]   ;;  %v3921_v56 = vld [vmem:[%s4729_s7 + $0x10] sm:$0xff]  }
 0x165   : > { %3724 = vmatpush3.bf16.msra.mxu0 %v3895_v54  ;;  %v3300_v20 = vcombine.low %v2305_v1, %v2319_v2  ;;  %v3928_v54 = vld [vmem:[%s4009_s16] sm:$0xff]   ;;  %v2505_v57 = vsel %vm4295_vm12, %v3310_v39, %v2504_v25  ;;  %v3922_v48 = vld [vmem:[%s4727_s5 + $0x18] sm:$0xff]   ;;  %v3924_v1 = vld [vmem:[%s4727_s5 + $0x10] sm:$0xff]  }
 0x166   : > { %3694 = vmatpush3.bf16.msra.mxu1 %v3894_v49  ;;  %3725 = vmatprep.subr.bf16.mxu0 %v3897_v45  ;;  %v3900_v49 = vld [vmem:[%s4725_s3 + $0x180] sm:$0xff]   ;;  %v2525_v14 = vsel %vm4295_vm12, %v3315_v51, %v2524_v35 }
 0x167   : > { %3695 = vmatprep.subr.bf16.mxu1 %v3896_v58  ;;  %v3925_v2 = vld [vmem:[%s4729_s7] sm:$0xff]  }
 0x169   : > { %3726 = vmatpush3.bf16.msra.mxu0 %v3897_v45  ;;  %v3911_v45 = vld [vmem:[%s4725_s3 + $0x200] sm:$0xff]  }
 0x16a   : > { %3696 = vmatpush3.bf16.msra.mxu1 %v3896_v58  ;;  %v3333_v58 = vcombine.low %v2501_v31, %v2505_v57  ;;  %3759 = vmatprep.subr.bf16.mxu0 %v3912_v41 }
 0x16b   : > { %3697 = vmatprep.subr.bf16.mxu1 %v3898_v16 }
 0x16c   : > { %3728 = vmatmul.mubr.bf16.vlgmr.msra.gmra.mxu0 %v3298_v44  ;;  %v3918_v44 = vld [vmem:[%s4727_s5 + $0x28] sm:$0xff]  }
 0x16d   : > { %3731 = vmatprep.mubr.bf16.mxu0 %v3299_v3  ;;  %3760 = vmatpush3.bf16.msra.mxu0 %v3912_v41  ;;  %v3920_v3 = vld [vmem:[%s4727_s5 + $0x20] sm:$0xff]  }
 0x16e   : > { %3698 = vmatpush3.bf16.msra.mxu1 %v3898_v16  ;;  %v3311_v16 = vrot.slane %v2476_v5, 9  ;;  %3761 = vmatprep.subr.bf16.mxu0 %v3913_v28 }
 0x16f   : > { %3699 = vmatprep.subr.bf16.mxu1 %v3899_v37 }
 0x170   : > { %v2509_v47 = vsel %vm4295_vm12, %v3311_v16, %v2508_v17 }
 0x171   : > { %v3334_v19 = vcombine.low %v2509_v47, %v2513_v18  ;;  %3762 = vmatpush3.bf16.msra.mxu0 %v3913_v28 }
 0x172   : > { %3700 = vmatpush3.bf16.msra.mxu1 %v3899_v37  ;;  %v3336_v37 = vcombine.low %v2525_v14, %v2529_v10  ;;  %3763 = vmatprep.subr.bf16.mxu0 %v3915_v21 }
 0x173   : > { %3701 = vmatprep.subr.bf16.mxu1 %v3900_v49 }
 0x174   : > { %3732 = vmatmul.mubr.bf16.gmra.mxu0 %v3300_v20  ;;  %v3926_v20 = vld [vmem:[%s4727_s5 + $0x8] sm:$0xff]  }
 0x175   : > { %3775 = vmatprep.mubr.bf16.mxu0 %v3928_v54  ;;  %3764 = vmatpush3.bf16.msra.mxu0 %v3915_v21 }
 0x176   : > { %3702 = vmatpush3.bf16.msra.mxu1 %v3900_v49  ;;  %3765 = vmatprep.subr.bf16.mxu0 %v3917_v43 }
 0x177   : > { %3735 = vmatprep.subr.bf16.mxu1 %v3902_v50 }
 0x179   : > { %3704 = vmatmul.mubr.bf16.vlgmr.msra.gmra.mxu1 %v3901_v12  ;;  %3766 = vmatpush3.bf16.msra.mxu0 %v3917_v43  ;;  %v3929_v12 = vld [vmem:[%s4009_s16 + $0x8] sm:$0xff]  }
 0x17a   : > { %3707 = vmatprep.mubr.bf16.mxu1 %v3903_v33  ;;  %3736 = vmatpush3.bf16.msra.mxu1 %v3902_v50  ;;  %v3930_v33 = vld [vmem:[%s4009_s16 + $0x10] sm:$0xff]  }
 0x17b   : > { %3737 = vmatprep.subr.bf16.mxu1 %v3904_v6  ;;  %3767 = vmatprep.subr.bf16.mxu0 %v3919_v46 }
 0x17d   : > { %3768 = vmatpush3.bf16.msra.mxu0 %v3919_v46 }
 0x17e   : > { %3738 = vmatpush3.bf16.msra.mxu1 %v3904_v6  ;;  %3769 = vmatprep.subr.bf16.mxu0 %v3921_v56  ;;  %v3927_v6 = vld [vmem:[%s4727_s5] sm:$0xff]  }
 0x17f   : > { %3739 = vmatprep.subr.bf16.mxu1 %v3906_v38 }
 0x181   : > { %3708 = vmatmul.mubr.bf16.gmra.mxu1 %v3905_v36  ;;  %3770 = vmatpush3.bf16.msra.mxu0 %v3921_v56 }
 0x182   : > { %3740 = vmatpush3.bf16.msra.mxu1 %v3906_v38  ;;  %3751 = vmatprep.mubr.bf16.mxu1 %v3333_v58 }
 0x183   : > { %3741 = vmatprep.subr.bf16.mxu1 %v3907_v15  ;;  %3771 = vmatprep.subr.bf16.mxu0 %v3923_v61 }
 0x185   : > { %3772 = vmatpush3.bf16.msra.mxu0 %v3923_v61 }
 0x186   : > { %3742 = vmatpush3.bf16.msra.mxu1 %v3907_v15  ;;  %3773 = vmatprep.subr.bf16.mxu0 %v3925_v2 }
 0x187   : > { %3743 = vmatprep.subr.bf16.mxu1 %v3908_v40 }
 0x189   : > { %3774 = vmatpush3.bf16.msra.mxu0 %v3925_v2 }
 0x18a   : > { %3744 = vmatpush3.bf16.msra.mxu1 %v3908_v40 }
 0x18b   : > { %3745 = vmatprep.subr.bf16.mxu1 %v3909_v59 }
 0x18c   : > { %3776 = vmatmul.mubr.bf16.vlgmr.msra.gmra.mxu0 %v3929_v12 }
 0x18d   : > { %3779 = vmatprep.mubr.bf16.mxu0 %v3930_v33 }
 0x18e   : > { %3746 = vmatpush3.bf16.msra.mxu1 %v3909_v59 }
 0x18f   : > { %3747 = vmatprep.subr.bf16.mxu1 %v3910_v60 }
 0x192   : > { %3748 = vmatpush3.bf16.msra.mxu1 %v3910_v60 }
 0x193   : > { %3749 = vmatprep.subr.bf16.mxu1 %v3911_v45 }
 0x194   : > { %3780 = vmatmul.mubr.bf16.gmra.mxu0 %v3931_v32 }
 0x196   : > { %3750 = vmatpush3.bf16.msra.mxu1 %v3911_v45 }
 0x197   : > { %3783 = vmatprep.subr.bf16.mxu1 %v3914_v29 }
 0x199   : > { %3752 = vmatmul.mubr.bf16.vlgmr.msra.gmra.mxu1 %v3334_v19 }
 0x19a   : > { %3755 = vmatprep.mubr.bf16.mxu1 %v3335_v34  ;;  %3784 = vmatpush3.bf16.msra.mxu1 %v3914_v29 }
 0x19b   : > { %3785 = vmatprep.subr.bf16.mxu1 %v3916_v42 }
 0x19e   : > { %3786 = vmatpush3.bf16.msra.mxu1 %v3916_v42 }
 0x19f   : > { %3787 = vmatprep.subr.bf16.mxu1 %v3918_v44 }
 0x1a1   : > { %3756 = vmatmul.mubr.bf16.gmra.mxu1 %v3336_v37 }
 0x1a2   : > { %3788 = vmatpush3.bf16.msra.mxu1 %v3918_v44 }
 0x1a3   : > { %3789 = vmatprep.subr.bf16.mxu1 %v3920_v3 }
 0x1a6   : > { %3790 = vmatpush3.bf16.msra.mxu1 %v3920_v3 }
 0x1a7   : > { %3791 = vmatprep.subr.bf16.mxu1 %v3922_v48 }
 0x1aa   : > { %3792 = vmatpush3.bf16.msra.mxu1 %v3922_v48 }
 0x1ab   : > { %3793 = vmatprep.subr.bf16.mxu1 %v3924_v1 }
 0x1ae   : > { %3794 = vmatpush3.bf16.msra.mxu1 %v3924_v1 }
 0x1af   : > { %3795 = vmatprep.subr.bf16.mxu1 %v3926_v20 }
 0x1b2   : > { %3796 = vmatpush3.bf16.msra.mxu1 %v3926_v20 }
 0x1b3   : > { %3797 = vmatprep.subr.bf16.mxu1 %v3927_v6 }
 0x1b6   : > { %3798 = vmatpush3.bf16.msra.mxu1 %v3927_v6 }
 0x1cc   : > { %v3585_v54 = vpop.f32.mrf.mxu0 }
 0x1ce   : > { %v1115_v38 = vpop.f32.mrf.mxu0 }
 0x1d0   : > { %v3586_v25 = vpop.f32.mrf.mxu0 }
 0x1d2   : > { %v1118_v36 = vpop.f32.mrf.mxu0 }
 0x1d6   : > { %v3589_v15 = vpop.f32.mrf.mxu0 }
 0x1d8   : > { %v1131_v40 = vpop.f32.mrf.mxu0 }
 0x1d9   : > { %v4657_v49 = vpop.f32.mrf.mxu1 }
 0x1da   : > { %v3590_v60 = vpop.f32.mrf.mxu0  ;;  %v1124_v3 = vadd.f32 %v3585_v54, %v4657_v49 }
 0x1db   : > { %v4665_v50 = vpop.f32.mrf.mxu1 }
 0x1dc   : > { %v1134_v63 = vpop.f32.mrf.mxu0  ;;  %v1116_v46 = vadd.f32 %v1115_v38, %v4665_v50 }
 0x1dd   : > { %v4670_v4 = vpop.f32.mrf.mxu1 }
 0x1de   : > { %v1127_v48 = vadd.f32 %v3586_v25, %v4670_v4 }
 0x1df   : > { %v981_v53 = vpop.f32.mrf.mxu1 }
 0x1e0   : > { %v1119_v20 = vadd.f32 %v1118_v36, %v981_v53 }
 0x1e1   : > { %v4677_v24 = vpop.f32.mrf.mxu1 }
 0x1e2   : > { %v1140_v50 = vadd.f32 %v3589_v15, %v4677_v24 }
 0x1e3   : > { %v994_v39 = vpop.f32.mrf.mxu1 }
 0x1e5   : > { %v4680_v31 = vpop.f32.mrf.mxu1 }
 0x1e6   : > { %4741 = vst [vmem:[#allocation3_spill] sm:$0xff] %v4680_v31 }
 0x1e7   : > { %v4682_v57 = vpop.f32.mrf.mxu1 }
 0x1e8   : > { %4742 = vst [vmem:[#allocation4_spill] sm:$0xff] %v4682_v57  ;;  %v1132_v57 = vadd.f32 %v1131_v40, %v994_v39 }
 0x1ec   : > { %v3633_v45 = vpop.f32.mrf.mxu0 }
 0x1ed   : > { %v4746_v54 = vld [vmem:[#allocation3_spill] sm:$0xff] }
 0x1ee   : > { %v1490_v7 = vpop.f32.mrf.mxu0  ;;  %v1143_v4 = vadd.f32 %v3590_v60, %v4746_v54 }
 0x1f0   : > { %v3634_v8 = vpop.f32.mrf.mxu0 }
 0x1f2   : > { %v1493_v11 = vpop.f32.mrf.mxu0 }
 0x1f4   : > { %v3637_v16 = vpop.f32.mrf.mxu0 }
 0x1f6   : > { %v1506_v18 = vpop.f32.mrf.mxu0 }
 0x1f8   : > { %v3638_v23 = vpop.f32.mrf.mxu0 }
 0x1f9   : > { %v3609_v58 = vpop.f32.mrf.mxu1 }
 0x1fa   : > { %v1509_v27 = vpop.f32.mrf.mxu0  ;;  %v1353_v1 = vadd.f32 %v3609_v58, %v1124_v3 }
 0x1fb   : > { %v1320_v59 = vpop.f32.mrf.mxu1 }
 0x1fc   : > { %v1351_v61 = vadd.f32 %v1320_v59, %v1116_v46  ;;  %v4747_v46 = vld [vmem:[#allocation4_spill] sm:$0xff] }
 0x1fd   : > { %v3610_v62 = vpop.f32.mrf.mxu1  ;;  %v1135_v53 = vadd.f32 %v1134_v63, %v4747_v46 }
 0x1fe   : > { %v1354_v12 = vadd.f32 %v3610_v62, %v1127_v48  ;;  %v1521_v32 = vadd.f32 %v1490_v7, %v1351_v61 }
 0x1ff   : > { %v1323_v0 = vpop.f32.mrf.mxu1 }
 0x200   : > { %v1352_v33 = vadd.f32 %v1323_v0, %v1119_v20  ;;  %v1524_v31 = vadd.f32 %v3634_v8, %v1354_v12 }
 0x201   : > { %v3613_v5 = vpop.f32.mrf.mxu1 }
 0x202   : > { %v1522_v58 = vadd.f32 %v1493_v11, %v1352_v33  ;;  %v1357_v36 = vadd.f32 %v3613_v5, %v1140_v50 }
 0x203   : > { %v1336_v52 = vpop.f32.mrf.mxu1 }
 0x204   : > { %v1355_v25 = vadd.f32 %v1336_v52, %v1132_v57  ;;  %v1527_v15 = vadd.f32 %v3637_v16, %v1357_v36 }
 0x205   : > { %v3614_v9 = vpop.f32.mrf.mxu1 }
 0x206   : > { %v1358_v0 = vadd.f32 %v3614_v9, %v1143_v4  ;;  %v1525_v8 = vadd.f32 %v1506_v18, %v1355_v25 }
 0x207   : > { %v1339_v13 = vpop.f32.mrf.mxu1 }
 0x208   : > { %v1356_v3 = vadd.f32 %v1339_v13, %v1135_v53  ;;  %v1528_v57 = vadd.f32 %v3638_v23, %v1358_v0 }
 0x20a   : > { %v1526_v63 = vadd.f32 %v1509_v27, %v1356_v3  ;;  %v3345_v27 = vld [vmem:[%s4726_s4] ss:$0 sm:$0xff] }
 0x20c   : > { %v3681_v19 = vpop.f32.mrf.mxu0 }
 0x20e   : > { %v1982_v34 = vpop.f32.mrf.mxu0 }
 0x210   : > { %v3682_v35 = vpop.f32.mrf.mxu0 }
 0x212   : > { %v1985_v14 = vpop.f32.mrf.mxu0 }
 0x214   : > { %v4684_v37 = vpop.f32.mrf.mxu0 }
 0x215   : > { %4743 = vst [vmem:[#allocation5_spill] sm:$0xff] %v4684_v37 }
 0x216   : > { %v1998_v28 = vpop.f32.mrf.mxu0 }
 0x218   : > { %v4686_v21 = vpop.f32.mrf.mxu0 }
 0x219   : > { %v3657_v17 = vpop.f32.mrf.mxu1  ;;  %4744 = vst [vmem:[#allocation6_spill] sm:$0xff] %v4686_v21  ;;  %v1523_v21 = vadd.f32 %v3633_v45, %v1353_v1 }
 0x21a   : > { %v4688_v43 = vpop.f32.mrf.mxu0 }
 0x21b   : > { %v1772_v22 = vpop.f32.mrf.mxu1  ;;  %4745 = vst [vmem:[#allocation7_spill] sm:$0xff] %v4688_v43  ;;  %v1805_v38 = vadd.f32 %v3657_v17, %v1523_v21 }
 0x21c   : > { %v1803_v43 = vadd.f32 %v1772_v22, %v1521_v32 }
 0x21d   : > { %v3658_v55 = vpop.f32.mrf.mxu1  ;;  %v2015_v40 = vadd.f32 %v3681_v19, %v1805_v38 }
 0x21e   : > { %v1806_v59 = vadd.f32 %v3658_v55, %v1524_v31  ;;  %v2013_v45 = vadd.f32 %v1982_v34, %v1803_v43 }
 0x21f   : > { %v1775_v47 = vpop.f32.mrf.mxu1 }
 0x220   : > { %v1804_v7 = vadd.f32 %v1775_v47, %v1522_v58  ;;  %v2016_v24 = vadd.f32 %v3682_v35, %v1806_v59 }
 0x221   : > { %v3661_v30 = vpop.f32.mrf.mxu1 }
 0x222   : > { %v2014_v52 = vadd.f32 %v1985_v14, %v1804_v7  ;;  %v1809_v11 = vadd.f32 %v3661_v30, %v1527_v15  ;;  %v4749_v14 = vld [vmem:[#allocation6_spill] sm:$0xff] }
 0x223   : > { %v1788_v51 = vpop.f32.mrf.mxu1 }
 0x224   : > { %v1807_v60 = vadd.f32 %v1788_v51, %v1525_v8 }
 0x225   : > { %v3662_v26 = vpop.f32.mrf.mxu1 }
 0x226   : > { %v1810_v9 = vadd.f32 %v3662_v26, %v1528_v57  ;;  %v2017_v18 = vadd.f32 %v1998_v28, %v1807_v60 }
 0x227   : > { %v1791_v10 = vpop.f32.mrf.mxu1 }
 0x228   : > { %v1808_v13 = vadd.f32 %v1791_v10, %v1526_v63  ;;  %v2020_v30 = vadd.f32 %v4749_v14, %v1810_v9 }
 0x22c   : > { %v3729_v56 = vpop.f32.mrf.mxu0 }
 0x22e   : > { %v2435_v6 = vpop.f32.mrf.mxu0 }
 0x230   : > { %v3730_v49 = vpop.f32.mrf.mxu0 }
 0x232   : > { %v2438_v39 = vpop.f32.mrf.mxu0 }
 0x234   : > { %v3733_v5 = vpop.f32.mrf.mxu0 }
 0x236   : > { %v2451_v16 = vpop.f32.mrf.mxu0 }
 0x238   : > { %v3734_v33 = vpop.f32.mrf.mxu0 }
 0x239   : > { %v3705_v41 = vpop.f32.mrf.mxu1 }
 0x23a   : > { %v2186_v17 = vadd.f32 %v3705_v41, %v2015_v40  ;;  %v4748_v41 = vld [vmem:[#allocation5_spill] sm:$0xff]  ;;  %v2454_v53 = vpop.f32.mrf.mxu0 }
 0x23b   : > { %v2153_v29 = vpop.f32.mrf.mxu1  ;;  %v2019_v48 = vadd.f32 %v4748_v41, %v1809_v11 }
 0x23c   : > { %v2184_v22 = vadd.f32 %v2153_v29, %v2013_v45  ;;  %v2468_v43 = vadd.f32 %v3729_v56, %v2186_v17  ;;  %v4750_v56 = vld [vmem:[#allocation7_spill] sm:$0xff] }
 0x23d   : > { %v3706_v42 = vpop.f32.mrf.mxu1  ;;  %v2018_v61 = vadd.f32 %v4750_v56, %v1808_v13 }
 0x23e   : > { %v2187_v31 = vadd.f32 %v3706_v42, %v2016_v24  ;;  %v2466_v34 = vadd.f32 %v2435_v6, %v2184_v22 }
 0x23f   : > { %v2156_v44 = vpop.f32.mrf.mxu1 }
 0x240   : > { %v2185_v47 = vadd.f32 %v2156_v44, %v2014_v52  ;;  %v2469_v35 = vadd.f32 %v3730_v49, %v2187_v31 }
 0x241   : > { %v3709_v2 = vpop.f32.mrf.mxu1 }
 0x242   : > { %v2467_v44 = vadd.f32 %v2438_v39, %v2185_v47  ;;  %v2190_v10 = vadd.f32 %v3709_v2, %v2019_v48 }
 0x243   : > { %v2169_v37 = vpop.f32.mrf.mxu1 }
 0x244   : > { %v2188_v42 = vadd.f32 %v2169_v37, %v2017_v18  ;;  %v2472_v4 = vadd.f32 %v3733_v5, %v2190_v10 }
 0x245   : > { %v3710_v62 = vpop.f32.mrf.mxu1 }
 0x246   : > { %v2191_v1 = vadd.f32 %v3710_v62, %v2020_v30  ;;  %v2470_v49 = vadd.f32 %v2451_v16, %v2188_v42 }
 0x247   : > { %v2172_v21 = vpop.f32.mrf.mxu1 }
 0x248   : > { %v2189_v37 = vadd.f32 %v2172_v21, %v2018_v61  ;;  %v2473_v2 = vadd.f32 %v3734_v33, %v2191_v1 }
 0x24a   : > { %v2471_v45 = vadd.f32 %v2454_v53, %v2189_v37 }
 0x24c   : > { %v3777_v63 = vpop.f32.mrf.mxu0 }
 0x24e   : > { %v2825_v5 = vpop.f32.mrf.mxu0 }
 0x259   : > { %v3753_v55 = vpop.f32.mrf.mxu1 }
 0x25a   : > { %v2678_v51 = vadd.f32 %v3753_v55, %v2468_v43  ;;  %v3778_v55 = vpop.f32.mrf.mxu0 }
 0x25b   : > { %v2645_v19 = vpop.f32.mrf.mxu1 }
 0x25c   : > { %v2676_v29 = vadd.f32 %v2645_v19, %v2466_v34  ;;  %v2693_v32 = vadd.f32 %v3345_v27, %v2678_v51  ;;  %v2828_v9 = vpop.f32.mrf.mxu0  ;;  %v3362_v34 = vld [vmem:[%s4728_s6] ss:$0 sm:$0xff] }
 0x25d   : > { %v3754_v23 = vpop.f32.mrf.mxu1 }
 0x25e   : > { %v2679_v26 = vadd.f32 %v3754_v23, %v2469_v35  ;;  %v2691_v20 = vadd.f32 %v3345_v27, %v2676_v29  ;;  %v2701_v36 = vmax.f32 %v2693_v32, 0.0  ;;  %v3781_v43 = vpop.f32.mrf.mxu0 }
 0x25f   : > { %v2648_v28 = vpop.f32.mrf.mxu1 }
 0x260   : > { %v2694_v12 = vadd.f32 %v3345_v27, %v2679_v26  ;;  %v2677_v6 = vadd.f32 %v2648_v28, %v2467_v44  ;;  %v2699_v59 = vmax.f32 %v2691_v20, 0.0  ;;  %v2841_v51 = vpop.f32.mrf.mxu0 }
 0x261   : > { %v3757_v50 = vpop.f32.mrf.mxu1 }
 0x262   : > { %v2692_v38 = vadd.f32 %v3345_v27, %v2677_v6  ;;  %v2702_v54 = vmax.f32 %v2694_v12, 0.0  ;;  %v2682_v0 = vadd.f32 %v3757_v50, %v2472_v4  ;;  %v3782_v56 = vpop.f32.mrf.mxu0 }
 0x263   : > { %v2661_v25 = vpop.f32.mrf.mxu1 }
 0x264   : > { %v2700_v58 = vmax.f32 %v2692_v38, 0.0  ;;  %v2680_v46 = vadd.f32 %v2661_v25, %v2470_v49  ;;  %v2708_v39 = vpack.c.bf16 %v2702_v54, %v2701_v36  ;;  %v2697_v15 = vadd.f32 %v3345_v27, %v2682_v0  ;;  %v2844_v50 = vpop.f32.mrf.mxu0 }
 0x265   : > { %v3758_v62 = vpop.f32.mrf.mxu1 }
 0x266   : > { %v2683_v7 = vadd.f32 %v3758_v62, %v2473_v2  ;;  %v2707_v3 = vpack.c.bf16 %v2700_v58, %v2699_v59  ;;  %v2695_v8 = vadd.f32 %v3345_v27, %v2680_v46  ;;  %v2705_v31 = vmax.f32 %v2697_v15, 0.0 }
 0x267   : > { %v2664_v40 = vpop.f32.mrf.mxu1 }
 0x268   : > { %v2698_v22 = vadd.f32 %v3345_v27, %v2683_v7  ;;  %v2681_v24 = vadd.f32 %v2664_v40, %v2471_v45  ;;  %3799 = vmatprep.mubr.bf16.mxu1 %v2707_v3  ;;  %v2703_v60 = vmax.f32 %v2695_v8, 0.0 }
 0x269   : > { %3800 = vmatmul.mubr.bf16.vlgmr.msra.gmra.mxu1 %v2708_v39 }
 0x26a   : > { %v2696_v17 = vadd.f32 %v3345_v27, %v2681_v24  ;;  %v2706_v21 = vmax.f32 %v2698_v22, 0.0 }
 0x26c   : > { %v2704_v57 = vmax.f32 %v2696_v17, 0.0  ;;  %v2710_v11 = vpack.c.bf16 %v2706_v21, %v2705_v31 }
 0x26e   : > { %v2709_v52 = vpack.c.bf16 %v2704_v57, %v2703_v60 }
 0x270   : > { %3803 = vmatprep.mubr.bf16.mxu1 %v2709_v52 }
 0x271   : > { %3804 = vmatmul.mubr.bf16.gmra.mxu1 %v2710_v11 }
 0x329   : > { %v3801_v47 = vpop.f32.mrf.mxu1 }
 0x32a   : > { %v2947_v13 = vadd.f32 %v3801_v47, %v3777_v63 }
 0x32b   : > { %v2938_v19 = vpop.f32.mrf.mxu1 }
 0x32c   : > { %v2978_v18 = vadd.f32 %v3362_v34, %v2947_v13  ;;  %v2939_v29 = vadd.f32 %v2938_v19, %v2825_v5 }
 0x32d   : > { %v3802_v35 = vpop.f32.mrf.mxu1 }
 0x32e   : > { %v2986_v16 = vmax.f32 %v2978_v18, 0.0  ;;  %v2976_v41 = vadd.f32 %v3362_v34, %v2939_v29  ;;  %v2950_v48 = vadd.f32 %v3802_v35, %v3778_v55 }
 0x32f   : > { %v2941_v23 = vpop.f32.mrf.mxu1 }
 0x330   : > { %2994 = vst [vmem:[%s4709_s21 + $0x10] sm:$0xff] %v2986_v16  ;;  %v2984_v42 = vmax.f32 %v2976_v41, 0.0  ;;  %v2979_v14 = vadd.f32 %v3362_v34, %v2950_v48  ;;  %v2942_v30 = vadd.f32 %v2941_v23, %v2828_v9 }
 0x331   : > { %v3805_v27 = vpop.f32.mrf.mxu1 }
 0x332   : > { %2992 = vst [vmem:[%s4709_s21] sm:$0xff] %v2984_v42  ;;  %v2987_v26 = vmax.f32 %v2979_v14, 0.0  ;;  %v2977_v44 = vadd.f32 %v3362_v34, %v2942_v30  ;;  %v2963_v10 = vadd.f32 %v3805_v27, %v3781_v43 }
 0x333   : > { %v2954_v61 = vpop.f32.mrf.mxu1 }
 0x334   : > { %2995 = vst [vmem:[%s4709_s21 + $0x18] sm:$0xff] %v2987_v26  ;;  %v2985_v28 = vmax.f32 %v2977_v44, 0.0  ;;  %v2982_v1 = vadd.f32 %v3362_v34, %v2963_v10  ;;  %v2955_v20 = vadd.f32 %v2954_v61, %v2841_v51 }
 0x335   : > { %v3806_v12 = vpop.f32.mrf.mxu1 }
 0x336   : > { %2993 = vst [vmem:[%s4709_s21 + $0x8] sm:$0xff] %v2985_v28  ;;  %v2990_v6 = vmax.f32 %v2982_v1, 0.0  ;;  %v2980_v33 = vadd.f32 %v3362_v34, %v2955_v20  ;;  %v2966_v32 = vadd.f32 %v3806_v12, %v3782_v56 }
 0x337   : > { %v2957_v37 = vpop.f32.mrf.mxu1 }
 0x338   : > { %2998 = vst [vmem:[%s4709_s21 + $0x30] sm:$0xff] %v2990_v6  ;;  %v2988_v38 = vmax.f32 %v2980_v33, 0.0  ;;  %v2983_v49 = vadd.f32 %v3362_v34, %v2966_v32  ;;  %v2958_v54 = vadd.f32 %v2957_v37, %v2844_v50 }
 0x33a   : > { %2996 = vst [vmem:[%s4709_s21 + $0x20] sm:$0xff] %v2988_v38  ;;  %v2991_v4 = vmax.f32 %v2983_v49, 0.0  ;;  %v2981_v25 = vadd.f32 %v3362_v34, %v2958_v54 }
 0x33c   : > { %2999 = vst [vmem:[%s4709_s21 + $0x38] sm:$0xff] %v2991_v4  ;;  %v2989_v59 = vmax.f32 %v2981_v25, 0.0 }
 0x33e   : > { %2997 = vst [vmem:[%s4709_s21 + $0x28] sm:$0xff] %v2989_v59 }
 0x33f PF: > { %s18_s27 = sadd.s32 1, %s3938_s27  }
 0x340   : > { %p15_p4 = scmp.ge.s32.totalorder %s18_s27, 4  }
 0x342   :  { %17 = sbr.rel (!%p15_p4) target bundleno = 1 (0x1), region = 93 }

</bundles_post_ra>
